<compile_context>
chip_gen: v7x
topology: tpu7x:2x2x1
jax: 0.10.0
libtpu: 0.0.40
codegen_flags: <defaults>
</compile_context>

<pallas_src>
import math

import jax
import jax.numpy as jnp
from jax.experimental import pallas as pl
from jax.experimental.pallas import tpu as pltpu

HIDDEN_LOGICAL = 756     # matches the PyTorch module
LANE = 128
TARGET_TILE_B = 512      # per perf review: >=512-row tiles to reach ~85% roofline


def _round_up(x, m):
    return ((x + m - 1) // m) * m


def actor_mlp_kernel(x_ref, w1_ref, b1_ref, w2_ref, b2_ref, w3_ref, b3_ref, out_ref):
    # x is already bf16 (pre-cast in the wrapper); all matmuls accumulate f32 on the MXU.
    # layer 1: ReLU(x @ W1 + b1)   -- fuse bias+ReLU, keep only the bf16 copy live
    h1 = jnp.dot(x_ref[...], w1_ref[...], preferred_element_type=jnp.float32)
    h1 = jnp.maximum(h1 + b1_ref[...], 0.0).astype(jnp.bfloat16)
    # layer 2: ReLU(h1 @ W2 + b2)
    h2 = jnp.dot(h1, w2_ref[...], preferred_element_type=jnp.float32)
    h2 = jnp.maximum(h2 + b2_ref[...], 0.0).astype(jnp.bfloat16)
    # layer 3: h2 @ W3 + b3 (no activation), f32 output
    out = jnp.dot(h2, w3_ref[...], preferred_element_type=jnp.float32)
    out_ref[...] = out + b3_ref[...]


def _pick_batch_tiling(B):
    """Choose (tile_b, num_steps) so that:
       * tiles are ~TARGET_TILE_B rows (amortizes per-grid-step overhead),
       * tiles are equalized -> batch padding waste is <8 rows per step,
       * there are >=2 grid steps whenever B > 8 (both v7x TCs get work)."""
    if B <= 8:
        return _round_up(max(B, 1), 8), 1
    num_steps = max(pl.cdiv(B, TARGET_TILE_B), 2)
    tile_b = _round_up(pl.cdiv(B, num_steps), 8)
    return tile_b, num_steps


def td3_bc_forward(state, kparams):
    """state: [B, state_dim] float32.  kparams: padded/bf16 kernel params."""
    B, state_dim = state.shape
    H = kparams["w1"].shape[1]          # padded hidden (768)
    out_pad = kparams["w3"].shape[1]    # padded output lanes (128)
    action_dim = kparams["action_dim"]

    tile_b, num_steps = _pick_batch_tiling(B)
    B_pad = tile_b * num_steps

    # Pre-cast activations to bf16 (f32 accumulation stays in-kernel); pad batch.
    x = state.astype(jnp.bfloat16)
    if B_pad != B:
        x = jnp.pad(x, ((0, B_pad - B), (0, 0)))

    out = pl.pallas_call(
        actor_mlp_kernel,
        out_shape=jax.ShapeDtypeStruct((B_pad, out_pad), jnp.float32),
        grid=(num_steps,),
        in_specs=[
            pl.BlockSpec((tile_b, state_dim), lambda i: (i, 0)),   # x: batch tiles
            pl.BlockSpec((state_dim, H),      lambda i: (0, 0)),   # w1 resident
            pl.BlockSpec((1, H),              lambda i: (0, 0)),   # b1 resident
            pl.BlockSpec((H, H),              lambda i: (0, 0)),   # w2 resident
            pl.BlockSpec((1, H),              lambda i: (0, 0)),   # b2 resident
            pl.BlockSpec((H, out_pad),        lambda i: (0, 0)),   # w3 resident
            pl.BlockSpec((1, out_pad),        lambda i: (0, 0)),   # b3 resident
        ],
        out_specs=pl.BlockSpec((tile_b, out_pad), lambda i: (i, 0)),
        compiler_params=pltpu.CompilerParams(
            dimension_semantics=("parallel",),
            vmem_limit_bytes=32 << 20,
        ),
    )(
        x,
        kparams["w1"], kparams["b1"],
        kparams["w2"], kparams["b2"],
        kparams["w3"], kparams["b3"],
    )
    return out[:B, :action_dim]


def init_params(key, state_dim, action_dim, hidden=HIDDEN_LOGICAL):
    """Deterministic init mimicking the PyTorch Linear layers.
    PyTorch Linear weight is (out, in); we store the transpose (in, out)."""
    ks = jax.random.split(key, 6)

    def linear(kw, kb, fan_in, fan_out):
        bound = 1.0 / math.sqrt(fan_in)
        w = jax.random.uniform(kw, (fan_in, fan_out), jnp.float32, -bound, bound)
        b = jax.random.uniform(kb, (1, fan_out), jnp.float32, -bound, bound)
        return w, b

    w1, b1 = linear(ks[0], ks[1], state_dim, hidden)
    w2, b2 = linear(ks[2], ks[3], hidden, hidden)
    w3, b3 = linear(ks[4], ks[5], hidden, action_dim)
    return {"w1": w1, "b1": b1, "w2": w2, "b2": b2, "w3": w3, "b3": b3}


def prepare_kernel_params(params):
    """Pad hidden 756->768 and output->128 lanes with zeros (math-preserving),
    cast weights to bf16, keep biases f32."""
    w1, b1 = params["w1"], params["b1"]
    w2, b2 = params["w2"], params["b2"]
    w3, b3 = params["w3"], params["b3"]
    hidden = w1.shape[1]
    action_dim = w3.shape[1]
    dh = _round_up(hidden, LANE) - hidden
    do = _round_up(action_dim, LANE) - action_dim
    return {
        "w1": jnp.pad(w1, ((0, 0), (0, dh))).astype(jnp.bfloat16),
        "b1": jnp.pad(b1, ((0, 0), (0, dh))),
        "w2": jnp.pad(w2, ((0, dh), (0, dh))).astype(jnp.bfloat16),
        "b2": jnp.pad(b2, ((0, 0), (0, dh))),
        "w3": jnp.pad(w3, ((0, dh), (0, do))).astype(jnp.bfloat16),
        "b3": jnp.pad(b3, ((0, 0), (0, do))),
        "action_dim": action_dim,
    }


def reference_forward_bf16(state, kparams):
    """Same bf16-activation/weight, f32-accumulate numerical path as the kernel."""
    x = state.astype(jnp.bfloat16)
    h1 = jnp.maximum(
        jnp.dot(x, kparams["w1"], preferred_element_type=jnp.float32) + kparams["b1"], 0.0
    ).astype(jnp.bfloat16)
    h2 = jnp.maximum(
        jnp.dot(h1, kparams["w2"], preferred_element_type=jnp.float32) + kparams["b2"], 0.0
    ).astype(jnp.bfloat16)
    out = jnp.dot(h2, kparams["w3"], preferred_element_type=jnp.float32) + kparams["b3"]
    return out[:, :kparams["action_dim"]]


def reference_forward_f32(state, params):
    """Full-precision reference matching the original PyTorch module."""
    h1 = jnp.maximum(state @ params["w1"] + params["b1"], 0.0)
    h2 = jnp.maximum(h1 @ params["w2"] + params["b2"], 0.0)
    return h2 @ params["w3"] + params["b3"]


if __name__ == "__main__":
    key = jax.random.PRNGKey(0)
    k_param, k_state1, k_state2 = jax.random.split(key, 3)

    state_dim = 16   # dim_obs
    action_dim = 1   # TD3_BC default

    params = init_params(k_param, state_dim, action_dim)
    kparams = prepare_kernel_params(params)

    # Case 1: tiny batch (single grid step).
    state = jax.random.normal(k_state1, (2, state_dim), jnp.float32)
    out = jax.block_until_ready(td3_bc_forward(state, kparams))
    assert out.shape == (2, action_dim)
    ref_bf16 = reference_forward_bf16(state, kparams)
    assert jnp.allclose(out, ref_bf16, atol=1e-4, rtol=1e-4), "mismatch vs bf16 reference (B=2)"
    ref_f32 = reference_forward_f32(state, params)
    assert jnp.allclose(out, ref_f32, atol=5e-2, rtol=5e-2), "mismatch vs f32 reference (B=2)"

    # Case 2: batch > 8 exercises the 2-step (megacore-splittable) grid + padding.
    state2 = jax.random.normal(k_state2, (20, state_dim), jnp.float32)
    out2 = jax.block_until_ready(td3_bc_forward(state2, kparams))
    assert out2.shape == (20, action_dim)
    ref2_bf16 = reference_forward_bf16(state2, kparams)
    assert jnp.allclose(out2, ref2_bf16, atol=1e-4, rtol=1e-4), "mismatch vs bf16 reference (B=20)"
    ref2_f32 = reference_forward_f32(state2, params)
    assert jnp.allclose(out2, ref2_f32, atol=5e-2, rtol=5e-2), "mismatch vs f32 reference (B=20)"

    print("KERNEL_OK")
</pallas_src>

<mosaic_0001>
module attributes {stable_mosaic.version = 11 : i64} {
  func.func @actor_mlp_kernel(%arg0: i32, %arg1: memref<8x16xbf16, #tpu.memory_space<vmem>>, %arg2: memref<16x768xbf16, #tpu.memory_space<vmem>>, %arg3: memref<1x768xf32, #tpu.memory_space<vmem>>, %arg4: memref<768x768xbf16, #tpu.memory_space<vmem>>, %arg5: memref<1x768xf32, #tpu.memory_space<vmem>>, %arg6: memref<768x128xbf16, #tpu.memory_space<vmem>>, %arg7: memref<1x128xf32, #tpu.memory_space<vmem>>, %arg8: memref<8x128xf32, #tpu.memory_space<vmem>>) attributes {dimension_semantics = [#tpu.dimension_semantics<parallel>], iteration_bounds = array<i64: 1>, scalar_prefetch = 0 : i64, scratch_operands = 0 : i64, tpu.core_type = #tpu.core_type<tc>, window_params = [{transform_indices = @transform_0, window_bounds = array<i64: 8, 16>}, {pipeline_mode = #tpu.pipeline_mode<synchronous>, transform_indices = @transform_1, window_bounds = array<i64: 16, 768>}, {pipeline_mode = #tpu.pipeline_mode<synchronous>, transform_indices = @transform_2, window_bounds = array<i64: 1, 768>}, {pipeline_mode = #tpu.pipeline_mode<synchronous>, transform_indices = @transform_3, window_bounds = array<i64: 768, 768>}, {pipeline_mode = #tpu.pipeline_mode<synchronous>, transform_indices = @transform_4, window_bounds = array<i64: 1, 768>}, {pipeline_mode = #tpu.pipeline_mode<synchronous>, transform_indices = @transform_5, window_bounds = array<i64: 768, 128>}, {pipeline_mode = #tpu.pipeline_mode<synchronous>, transform_indices = @transform_6, window_bounds = array<i64: 1, 128>}, {transform_indices = @transform_7, window_bounds = array<i64: 8, 128>}]} {
    %c0 = arith.constant 0 : index
    %c0_0 = arith.constant 0 : index
    %0 = vector.load %arg1[%c0, %c0_0] : memref<8x16xbf16, #tpu.memory_space<vmem>>, vector<8x16xbf16>
    %c0_1 = arith.constant 0 : index
    %c0_2 = arith.constant 0 : index
    %1 = vector.load %arg2[%c0_1, %c0_2] : memref<16x768xbf16, #tpu.memory_space<vmem>>, vector<16x768xbf16>
    %cst = arith.constant dense<0.000000e+00> : vector<8x768xf32>
    %2 = tpu.matmul %0, %1, %cst {dimension_numbers = #tpu.dot_dimension_numbers<[1], [0], [0], [1], [0, 0, 1, 1], [], []>} : vector<8x16xbf16>, vector<16x768xbf16>, vector<8x768xf32> -> vector<8x768xf32>
    %c0_3 = arith.constant 0 : index
    %c0_4 = arith.constant 0 : index
    %3 = vector.load %arg3[%c0_3, %c0_4] : memref<1x768xf32, #tpu.memory_space<vmem>>, vector<1x768xf32>
    %4 = vector.broadcast %3 : vector<1x768xf32> to vector<8x768xf32>
    %5 = arith.addf %2, %4 : vector<8x768xf32>
    %cst_5 = arith.constant 0.000000e+00 : f32
    %6 = vector.broadcast %cst_5 : f32 to vector<8x768xf32>
    %7 = arith.maximumf %5, %6 : vector<8x768xf32>
    %8 = arith.truncf %7 : vector<8x768xf32> to vector<8x768xbf16>
    %c0_6 = arith.constant 0 : index
    %c0_7 = arith.constant 0 : index
    %9 = vector.load %arg4[%c0_6, %c0_7] : memref<768x768xbf16, #tpu.memory_space<vmem>>, vector<768x768xbf16>
    %cst_8 = arith.constant dense<0.000000e+00> : vector<8x768xf32>
    %10 = tpu.matmul %8, %9, %cst_8 {dimension_numbers = #tpu.dot_dimension_numbers<[1], [0], [0], [1], [0, 0, 1, 1], [], []>} : vector<8x768xbf16>, vector<768x768xbf16>, vector<8x768xf32> -> vector<8x768xf32>
    %c0_9 = arith.constant 0 : index
    %c0_10 = arith.constant 0 : index
    %11 = vector.load %arg5[%c0_9, %c0_10] : memref<1x768xf32, #tpu.memory_space<vmem>>, vector<1x768xf32>
    %12 = vector.broadcast %11 : vector<1x768xf32> to vector<8x768xf32>
    %13 = arith.addf %10, %12 : vector<8x768xf32>
    %cst_11 = arith.constant 0.000000e+00 : f32
    %14 = vector.broadcast %cst_11 : f32 to vector<8x768xf32>
    %15 = arith.maximumf %13, %14 : vector<8x768xf32>
    %16 = arith.truncf %15 : vector<8x768xf32> to vector<8x768xbf16>
    %c0_12 = arith.constant 0 : index
    %c0_13 = arith.constant 0 : index
    %17 = vector.load %arg6[%c0_12, %c0_13] : memref<768x128xbf16, #tpu.memory_space<vmem>>, vector<768x128xbf16>
    %cst_14 = arith.constant dense<0.000000e+00> : vector<8x128xf32>
    %18 = tpu.matmul %16, %17, %cst_14 {dimension_numbers = #tpu.dot_dimension_numbers<[1], [0], [0], [1], [0, 0, 1, 1], [], []>} : vector<8x768xbf16>, vector<768x128xbf16>, vector<8x128xf32> -> vector<8x128xf32>
    %c0_15 = arith.constant 0 : index
    %c0_16 = arith.constant 0 : index
    %19 = vector.load %arg7[%c0_15, %c0_16] : memref<1x128xf32, #tpu.memory_space<vmem>>, vector<1x128xf32>
    %20 = vector.broadcast %19 : vector<1x128xf32> to vector<8x128xf32>
    %21 = arith.addf %18, %20 : vector<8x128xf32>
    %c0_17 = arith.constant 0 : index
    %c0_18 = arith.constant 0 : index
    %22 = vector.load %arg8[%c0_17, %c0_18] : memref<8x128xf32, #tpu.memory_space<vmem>>, vector<8x128xf32>
    tpu.vector_store %arg8[%c0_17, %c0_18], %21 {strides = array<i32>} : memref<8x128xf32, #tpu.memory_space<vmem>>, vector<8x128xf32>,
    return
  }
  func.func @transform_0(%arg0: i32) -> (i32, i32) {
    %c0_i32 = arith.constant 0 : i32
    %c0_i32_0 = arith.constant 0 : i32
    return %arg0, %c0_i32 : i32, i32
  }
  func.func @transform_1(%arg0: i32) -> (i32, i32) {
    %c0_i32 = arith.constant 0 : i32
    %c0_i32_0 = arith.constant 0 : i32
    %c0_i32_1 = arith.constant 0 : i32
    return %c0_i32, %c0_i32_0 : i32, i32
  }
  func.func @transform_2(%arg0: i32) -> (i32, i32) {
    %c0_i32 = arith.constant 0 : i32
    %c0_i32_0 = arith.constant 0 : i32
    %c0_i32_1 = arith.constant 0 : i32
    return %c0_i32, %c0_i32_0 : i32, i32
  }
  func.func @transform_3(%arg0: i32) -> (i32, i32) {
    %c0_i32 = arith.constant 0 : i32
    %c0_i32_0 = arith.constant 0 : i32
    %c0_i32_1 = arith.constant 0 : i32
    return %c0_i32, %c0_i32_0 : i32, i32
  }
  func.func @transform_4(%arg0: i32) -> (i32, i32) {
    %c0_i32 = arith.constant 0 : i32
    %c0_i32_0 = arith.constant 0 : i32
    %c0_i32_1 = arith.constant 0 : i32
    return %c0_i32, %c0_i32_0 : i32, i32
  }
  func.func @transform_5(%arg0: i32) -> (i32, i32) {
    %c0_i32 = arith.constant 0 : i32
    %c0_i32_0 = arith.constant 0 : i32
    %c0_i32_1 = arith.constant 0 : i32
    return %c0_i32, %c0_i32_0 : i32, i32
  }
  func.func @transform_6(%arg0: i32) -> (i32, i32) {
    %c0_i32 = arith.constant 0 : i32
    %c0_i32_0 = arith.constant 0 : i32
    %c0_i32_1 = arith.constant 0 : i32
    return %c0_i32, %c0_i32_0 : i32, i32
  }
  func.func @transform_7(%arg0: i32) -> (i32, i32) {
    %c0_i32 = arith.constant 0 : i32
    %c0_i32_0 = arith.constant 0 : i32
    return %arg0, %c0_i32 : i32, i32
  }
}

</mosaic_0001>

<bundles_post_ra>
// kernel: tpu_custom_call.1
= control target key start
LH: loop header
LB: loop body
LE: loop exit
PB: predicated region body
PF: predicated region fallthrough
CT: control target
= control target key end

     0   :  { %12 = vsyncpa [#allocation3], 0  ;;  %s4361_s0 = inlined_call_operand.hbm [shape: bf16[8,16], index: 0, kind: input, shape index: {}]   ;;  %s4362_s1 = inlined_call_operand.hbm [shape: bf16[16,768], index: 1, kind: input, shape index: {}]   ;;  %s4363_s2 = inlined_call_operand.hbm [shape: f32[1,768], index: 2, kind: input, shape index: {}]   ;;  %s4364_s3 = inlined_call_operand.hbm [shape: bf16[768,768], index: 3, kind: input, shape index: {}]   ;;  %s4365_s4 = inlined_call_operand.hbm [shape: f32[1,768], index: 4, kind: input, shape index: {}]   ;;  %s4366_s5 = inlined_call_operand.hbm [shape: bf16[768,128], index: 5, kind: input, shape index: {}]   ;;  %s4367_s6 = inlined_call_operand.hbm [shape: f32[1,128], index: 6, kind: input, shape index: {}]   ;;  %s4368_s7 = inlined_call_operand.hbm [shape: f32[8,128], index: 7, kind: output, shape index: {}]  }
   0x1   :  { %13 = vsyncpa [#allocation6], 0 }
   0x2   :  { %14 = vsyncpa [#allocation9], 0 }
   0x3   :  { %15 = vsyncpa [#allocation12], 0 }
   0x4   :  { %16 = vsyncpa [#allocation4], 0  ;;  %s4122_s24 = smov [#allocation5]   ;;  %s3936_s28 = scalar_lea.hbm %s4362_s1, 768 }
   0x5   :  { %s32_s25 = sshll.u32 %s4122_s24, 4  ;;  %p3937_p0 = scmp.ne.s32.totalorder %s4362_s1, %s3936_s28  ;;  %s33_s25 = int_to_ptr.vmem [resolvable:$true] %s32_s25 }
   0x6   :  { %p3940_p1 = scmp.lt.u32.totalorder %s3936_s28, %s4362_s1 }
   0x8   :  { %p3942_p2 = pnand %p3940_p1, %p3937_p0 }
   0xa   :  { %3945 = shalt.err (!%p3942_p2)
}
   0xb   :  { %s3946_s10 = scalar_lea.vmem %s33_s25, 768  ;;  %p3951_p4 = scmp.lt.s32.totalorder %s33_s25, %s33_s25 }
   0xc   :  { %p3947_p3 = scmp.ne.s32.totalorder %s33_s25, %s3946_s10  ;;  %p3952_p5 = scmp.lt.s32.totalorder %s3946_s10, %s3946_s10 }
   0xe   :  { %p3953_p6 = por %p3952_p5, %p3951_p4 }
  0x10   :  { %p3954_p7 = pnand %p3953_p6, %p3947_p3 }
  0x12   :  { %3957 = shalt.err (!%p3954_p7)
}
  0x13   :  { %s4123_s11 = smov 384   ;;  %s4124_s12 = smov 24  }
  0x14   :  { %38 = dma.hbm_to_vmem [thread:$0]  %s4362_s1, 768, %s33_s25, [#allocation6], %s4123_s11, %s4123_s11, %s4124_s12  }
  0x15   :  { %s4125_s15 = smov [#allocation8]   ;;  %s4126_s17 = smov [#allocation11]  }
  0x16   :  { %s54_s16 = sshll.u32 %s4125_s15, 4  ;;  %s76_s18 = sshll.u32 %s4126_s17, 4  ;;  %s55_s16 = int_to_ptr.vmem [resolvable:$true] %s54_s16  ;;  %s77_s18 = int_to_ptr.vmem [resolvable:$true] %s76_s18 }
  0x17   :  { %s3958_s21 = scalar_lea.hbm %s4364_s3, 36864 }
  0x18   :  { %p3959_p8 = scmp.ne.s32.totalorder %s4364_s3, %s3958_s21  ;;  %p3962_p9 = scmp.lt.u32.totalorder %s3958_s21, %s4364_s3 }
  0x1a   :  { %p3964_p10 = pnand %p3962_p9, %p3959_p8 }
  0x1c   :  { %3967 = shalt.err (!%p3964_p10)
}
  0x1d   :  { %s3968_s1 = scalar_lea.vmem %s55_s16, 36864  ;;  %p3973_p12 = scmp.lt.s32.totalorder %s55_s16, %s55_s16 }
  0x1e   :  { %p3969_p11 = scmp.ne.s32.totalorder %s55_s16, %s3968_s1  ;;  %p3974_p13 = scmp.lt.s32.totalorder %s3968_s1, %s3968_s1 }
  0x20   :  { %p3975_p0 = por %p3974_p13, %p3973_p12 }
  0x22   :  { %p3976_p1 = pnand %p3975_p0, %p3969_p11 }
  0x24   :  { %3979 = shalt.err (!%p3976_p1)
}
  0x25   :  { %60 = dma.hbm_to_vmem [thread:$0]  %s4364_s3, 36864, %s55_s16, [#allocation9], %s4123_s11, %s4123_s11, %s4124_s12  }
  0x26   :  { %s3980_s30 = scalar_lea.hbm %s4366_s5, 6144 }
  0x27   :  { %p3981_p2 = scmp.ne.s32.totalorder %s4366_s5, %s3980_s30  ;;  %p3984_p3 = scmp.lt.u32.totalorder %s3980_s30, %s4366_s5 }
  0x29   :  { %p3986_p4 = pnand %p3984_p3, %p3981_p2 }
  0x2b   :  { %3989 = shalt.err (!%p3986_p4)
}
  0x2c   :  { %s3990_s14 = scalar_lea.vmem %s77_s18, 6144  ;;  %p3995_p6 = scmp.lt.s32.totalorder %s77_s18, %s77_s18 }
  0x2d   :  { %p3991_p5 = scmp.ne.s32.totalorder %s77_s18, %s3990_s14  ;;  %p3996_p7 = scmp.lt.s32.totalorder %s3990_s14, %s3990_s14 }
  0x2f   :  { %p3997_p8 = por %p3996_p7, %p3995_p6 }
  0x31   :  { %p3998_p9 = pnand %p3997_p8, %p3991_p5 }
  0x33   :  { %4001 = shalt.err (!%p3998_p9)
}
  0x34   :  { %s4127_s3 = smov 64   ;;  %s4128_s11 = smov 4  }
  0x35   :  { %82 = dma.hbm_to_vmem [thread:$0]  %s4366_s5, 6144, %s77_s18, [#allocation12], %s4127_s3, %s4127_s3, %s4128_s11  }
  0x36   :  { %s4129_s16 = smov [#allocation2]   ;;  %s4130_s19 = smov [#allocation7]  }
  0x37   :  { %s23_s17 = sshll.u32 %s4129_s16, 4  ;;  %s45_s20 = sshll.u32 %s4130_s19, 4  ;;  %s24_s17 = int_to_ptr.vmem [resolvable:$true] %s23_s17  ;;  %s46_s20 = int_to_ptr.vmem [resolvable:$true] %s45_s20 }
  0x38   :  { %s4002_s23 = scalar_lea.hbm %s4361_s0, 64 }
  0x39   :  { %p4003_p10 = scmp.ne.s32.totalorder %s4361_s0, %s4002_s23  ;;  %p4006_p11 = scmp.lt.u32.totalorder %s4002_s23, %s4361_s0 }
  0x3b   :  { %p4008_p12 = pnand %p4006_p11, %p4003_p10 }
  0x3d   :  { %4011 = shalt.err (!%p4008_p12)
}
  0x3e   :  { %s4012_s5 = scalar_lea.vmem %s24_s17, 64  ;;  %p4017_p0 = scmp.lt.s32.totalorder %s24_s17, %s24_s17 }
  0x3f   :  { %p4013_p13 = scmp.ne.s32.totalorder %s24_s17, %s4012_s5  ;;  %p4018_p1 = scmp.lt.s32.totalorder %s4012_s5, %s4012_s5 }
  0x41   :  { %p4019_p2 = por %p4018_p1, %p4017_p0 }
  0x43   :  { %p4020_p3 = pnand %p4019_p2, %p4013_p13 }
  0x45   :  { %4023 = shalt.err (!%p4020_p3)
}
  0x46   :  { %26 = dma.hbm_to_vmem [thread:$0]  %s4361_s0, 64, %s24_s17, [#allocation3]  }
  0x47   :  { %s4024_s30 = scalar_lea.hbm %s4363_s2, 96 }
  0x48   :  { %p4025_p4 = scmp.ne.s32.totalorder %s4363_s2, %s4024_s30  ;;  %p4028_p5 = scmp.lt.u32.totalorder %s4024_s30, %s4363_s2 }
  0x4a   :  { %p4030_p6 = pnand %p4028_p5, %p4025_p4 }
  0x4c   :  { %4033 = shalt.err (!%p4030_p6)
}
  0x4d   :  { %s4034_s14 = scalar_lea.vmem %s46_s20, 96  ;;  %p4039_p8 = scmp.lt.s32.totalorder %s46_s20, %s46_s20 }
  0x4e   :  { %p4035_p7 = scmp.ne.s32.totalorder %s46_s20, %s4034_s14  ;;  %p4040_p9 = scmp.lt.s32.totalorder %s4034_s14, %s4034_s14 }
  0x50   :  { %p4041_p10 = por %p4040_p9, %p4039_p8 }
  0x52   :  { %p4042_p11 = pnand %p4041_p10, %p4035_p7 }
  0x54   :  { %4045 = shalt.err (!%p4042_p11)
}
  0x55   :  { %48 = dma.hbm_to_vmem [thread:$0]  %s4363_s2, 96, %s46_s20, [#allocation6]  }
  0x56   :  { %s4131_s11 = smov [#allocation10]   ;;  %s4132_s15 = smov [#allocation13]  }
  0x57   :  { %s67_s12 = sshll.u32 %s4131_s11, 4  ;;  %s89_s16 = sshll.u32 %s4132_s15, 4  ;;  %s68_s12 = int_to_ptr.vmem [resolvable:$true] %s67_s12  ;;  %s90_s16 = int_to_ptr.vmem [resolvable:$true] %s89_s16 }
  0x58   :  { %s4046_s21 = scalar_lea.hbm %s4365_s4, 96 }
  0x59   :  { %p4047_p12 = scmp.ne.s32.totalorder %s4365_s4, %s4046_s21  ;;  %p4050_p13 = scmp.lt.u32.totalorder %s4046_s21, %s4365_s4 }
  0x5b   :  { %p4052_p0 = pnand %p4050_p13, %p4047_p12 }
  0x5d   :  { %4055 = shalt.err (!%p4052_p0)
}
  0x5e   :  { %s4056_s2 = scalar_lea.vmem %s68_s12, 96  ;;  %p4061_p2 = scmp.lt.s32.totalorder %s68_s12, %s68_s12 }
  0x5f   :  { %p4057_p1 = scmp.ne.s32.totalorder %s68_s12, %s4056_s2  ;;  %p4062_p3 = scmp.lt.s32.totalorder %s4056_s2, %s4056_s2 }
  0x61   :  { %p4063_p4 = por %p4062_p3, %p4061_p2 }
  0x63   :  { %p4064_p5 = pnand %p4063_p4, %p4057_p1 }
  0x65   :  { %4067 = shalt.err (!%p4064_p5)
}
  0x66   :  { %70 = dma.hbm_to_vmem [thread:$0]  %s4365_s4, 96, %s68_s12, [#allocation9]  }
  0x67   :  { %s4068_s18 = scalar_lea.hbm %s4367_s6, 16 }
  0x68   :  { %p4069_p6 = scmp.ne.s32.totalorder %s4367_s6, %s4068_s18  ;;  %p4072_p7 = scmp.lt.u32.totalorder %s4068_s18, %s4367_s6 }
  0x6a   :  { %p4074_p8 = pnand %p4072_p7, %p4069_p6 }
  0x6c   :  { %4077 = shalt.err (!%p4074_p8)
}
  0x6d   :  { %s4078_s8 = scalar_lea.vmem %s90_s16, 16  ;;  %s4082_s9 = scalar_lea.vmem %s90_s16, 32 }
  0x6e   :  { %p4079_p9 = scmp.ne.s32.totalorder %s90_s16, %s4078_s8  ;;  %p4083_p10 = scmp.lt.s32.totalorder %s90_s16, %s90_s16 }
  0x6f   :  { %p4084_p11 = scmp.lt.s32.totalorder %s4082_s9, %s4078_s8 }
  0x71   :  { %p4085_p12 = por %p4084_p11, %p4083_p10 }
  0x73   :  { %p4086_p13 = pnand %p4085_p12, %p4079_p9 }
  0x75   :  { %4089 = shalt.err (!%p4086_p13)
}
  0x76   :  { %92 = dma.hbm_to_vmem [thread:$0]  %s4367_s6, 16, %s90_s16, [#allocation12]  }
  0x77   :  { %4112 = dma.done.wait [#allocation3], 64  }
  0x78   :  { %4113 = vsyncadd [#allocation3], 4294967232 }
  0x79   :  { %4114 = dma.done.wait [#allocation6], 864  }
  0x7a   :  { %4115 = vsyncadd [#allocation6], 4294966432 }
  0x7b   :  { %4116 = dma.done.wait [#allocation9], 36960  }
  0x7c   :  { %4117 = vsyncadd [#allocation9], 4294930336 }
  0x7d   :  { %4118 = dma.done.wait [#allocation12], 6160  }
  0x7e   :  { %4119 = vsyncadd [#allocation12], 4294961136  ;;  %v4133_v0 = vmov 0   ;;  %v3447_v1 = vld [vmem:[#allocation5 + $0x4] ss:$24 sps:$4 sm:$0xff]   ;;  %vm184_vm0 = vcmask 130048  }
  0x7f   :  { %220 = vmatprep.mubr.bf16.mxu1 %v4133_v0  ;;  %v3449_v2 = vld [vmem:[#allocation5] ss:$24 sps:$4 sm:$0xff]   ;;  %188 = vmatprep.subr.bf16.mxu1 %v3447_v1  ;;  %v115_v3 = vld [vmem:[#allocation2] sm:$0xf]  ;;  %v3452_v4 = vld [vmem:[#allocation5 + $0xc] ss:$24 sps:$4 sm:$0xff]  }
  0x80   :  { %189 = vmatpush1.bf16.msra.mxu1 %v3449_v2  ;;  %v3450_v5 = vld [vmem:[#allocation5 + $0x8] ss:$24 sps:$4 sm:$0xff]   ;;  %v3455_v6 = vld [vmem:[#allocation5 + $0x14] ss:$24 sps:$4 sm:$0xff]   ;;  %s4134_s6 = smov [#allocation14]  }
  0x81   :  { %229 = vmatprep.subr.bf16.mxu1 %v3452_v4  ;;  %v3456_v7 = vld [vmem:[#allocation8 + $0x4] ss:$24 sps:$4 sm:$0xff]   ;;  %v3458_v8 = vld [vmem:[#allocation8] ss:$24 sps:$4 sm:$0xff]   ;;  %v3459_v9 = vld [vmem:[#allocation8 + $0x34] ss:$24 sps:$4 sm:$0xff]  }
  0x82   :  { %2083 = vmatprep.subr.bf16.mxu0 %v3456_v7  ;;  %v3461_v10 = vld [vmem:[#allocation8 + $0x30] ss:$24 sps:$4 sm:$0xff]   ;;  %v3462_v11 = vld [vmem:[#allocation8 + $0x64] ss:$24 sps:$4 sm:$0xff]   ;;  %v3467_v14 = vld [vmem:[#allocation8 + $0x60] ss:$24 sps:$4 sm:$0xff]  }
  0x83   :  { %3000 = vmatmul.mubr.msk.bf16.vlgmr.msra.gmra.mrb[0].mxu1 %vm184_vm0, %v115_v3  ;;  %2084 = vmatpush1.bf16.msra.mxu0 %v3458_v8  ;;  %v3453_v12 = vld [vmem:[#allocation5 + $0x10] ss:$24 sps:$4 sm:$0xff]   ;;  %s2982_s13 = sshll.u32 %s4134_s6, 4  ;;  %s2983_s13 = int_to_ptr.vmem [resolvable:$true] %s2982_s13 }
  0x84   :  { %230 = vmatpush1.bf16.msra.mxu1 %v3450_v5  ;;  %261 = vmatprep.mubr.bf16.mxu1 %v4133_v0  ;;  %v3466_v13 = vld [vmem:[#allocation8 + $0x304] ss:$24 sps:$4 sm:$0xff]   ;;  %v3468_v15 = vld [vmem:[#allocation8 + $0x94] ss:$24 sps:$4 sm:$0xff]   ;;  %v3473_v16 = vld [vmem:[#allocation8 + $0x90] ss:$24 sps:$4 sm:$0xff]   ;;  %p4095_p1 = scmp.lt.s32.totalorder %s2983_s13, %s2983_s13 }
  0x85   :  { %270 = vmatprep.subr.bf16.mxu1 %v3455_v6  ;;  %2085 = vmatprep.subr.bf16.mxu0 %v3459_v9  ;;  %v3474_v17 = vld [vmem:[#allocation8 + $0xc4] ss:$24 sps:$4 sm:$0xff]   ;;  %v3464_v18 = vld [vmem:[#allocation8 + $0x300] ss:$24 sps:$4 sm:$0xff]   ;;  %v3472_v19 = vld [vmem:[#allocation8 + $0x334] ss:$24 sps:$4 sm:$0xff]  }
  0x86   :  { %v3479_v20 = vld [vmem:[#allocation8 + $0xc0] ss:$24 sps:$4 sm:$0xff]   ;;  %v3480_v21 = vld [vmem:[#allocation8 + $0xf4] ss:$24 sps:$4 sm:$0xff]   ;;  %v3470_v22 = vld [vmem:[#allocation8 + $0x330] ss:$24 sps:$4 sm:$0xff]  }
  0x87   :  { %2086 = vmatpush1.bf16.msra.mxu0 %v3461_v10  ;;  %v3478_v23 = vld [vmem:[#allocation8 + $0x364] ss:$24 sps:$4 sm:$0xff]   ;;  %v3485_v24 = vld [vmem:[#allocation8 + $0xf0] ss:$24 sps:$4 sm:$0xff]   ;;  %v3476_v26 = vld [vmem:[#allocation8 + $0x360] ss:$24 sps:$4 sm:$0xff]   ;;  %v124_v10 = vlaneseq }
  0x88   :  { %2087 = vmatprep.subr.bf16.mxu0 %v3462_v11  ;;  %v3486_v25 = vld [vmem:[#allocation8 + $0x124] ss:$24 sps:$4 sm:$0xff]   ;;  %v3484_v27 = vld [vmem:[#allocation8 + $0x394] ss:$24 sps:$4 sm:$0xff]   ;;  %v3491_v28 = vld [vmem:[#allocation8 + $0x120] ss:$24 sps:$4 sm:$0xff]  }
  0x89   :  { %v3492_v29 = vld [vmem:[#allocation8 + $0x154] ss:$24 sps:$4 sm:$0xff]   ;;  %v3482_v30 = vld [vmem:[#allocation8 + $0x390] ss:$24 sps:$4 sm:$0xff]   ;;  %v3490_v31 = vld [vmem:[#allocation8 + $0x3c4] ss:$24 sps:$4 sm:$0xff]  }
  0x8a   :  { %v3497_v32 = vld [vmem:[#allocation8 + $0x150] ss:$24 sps:$4 sm:$0xff]   ;;  %v3498_v33 = vld [vmem:[#allocation8 + $0x184] ss:$24 sps:$4 sm:$0xff]   ;;  %v3488_v34 = vld [vmem:[#allocation8 + $0x3c0] ss:$24 sps:$4 sm:$0xff]  }
  0x8b   :  { %3001 = vmatmul.mubr.msk.bf16.vlgmr.msra.gmra.mrb[4].mxu1 %vm184_vm0, %v115_v3  ;;  %2088 = vmatpush1.bf16.msra.mxu0 %v3467_v14  ;;  %v3496_v35 = vld [vmem:[#allocation8 + $0x3f4] ss:$24 sps:$4 sm:$0xff]   ;;  %v3503_v36 = vld [vmem:[#allocation8 + $0x180] ss:$24 sps:$4 sm:$0xff]   ;;  %v3494_v37 = vld [vmem:[#allocation8 + $0x3f0] ss:$24 sps:$4 sm:$0xff]  }
  0x8c   :  { %271 = vmatpush1.bf16.msra.mxu1 %v3453_v12  ;;  %302 = vmatprep.mubr.bf16.mxu1 %v4133_v0  ;;  %v3502_v38 = vld [vmem:[#allocation8 + $0x424] ss:$24 sps:$4 sm:$0xff]   ;;  %v3504_v39 = vld [vmem:[#allocation8 + $0x1b4] ss:$24 sps:$4 sm:$0xff]   ;;  %v3509_v40 = vld [vmem:[#allocation8 + $0x1b0] ss:$24 sps:$4 sm:$0xff]  }
  0x8d   :  { %2124 = vmatprep.subr.bf16.mxu1 %v3466_v13  ;;  %2089 = vmatprep.subr.bf16.mxu0 %v3468_v15  ;;  %v3510_v41 = vld [vmem:[#allocation8 + $0x1e4] ss:$24 sps:$4 sm:$0xff]   ;;  %v3500_v42 = vld [vmem:[#allocation8 + $0x420] ss:$24 sps:$4 sm:$0xff]   ;;  %v3508_v43 = vld [vmem:[#allocation8 + $0x454] ss:$24 sps:$4 sm:$0xff]  }
  0x8e   :  { %v3515_v44 = vld [vmem:[#allocation8 + $0x1e0] ss:$24 sps:$4 sm:$0xff]   ;;  %v3516_v45 = vld [vmem:[#allocation8 + $0x214] ss:$24 sps:$4 sm:$0xff]   ;;  %v3506_v46 = vld [vmem:[#allocation8 + $0x450] ss:$24 sps:$4 sm:$0xff]  }
  0x8f   :  { %2090 = vmatpush1.bf16.msra.mxu0 %v3473_v16  ;;  %v3514_v47 = vld [vmem:[#allocation8 + $0x484] ss:$24 sps:$4 sm:$0xff]   ;;  %v3521_v48 = vld [vmem:[#allocation8 + $0x210] ss:$24 sps:$4 sm:$0xff]   ;;  %v3512_v50 = vld [vmem:[#allocation8 + $0x480] ss:$24 sps:$4 sm:$0xff]  }
  0x90   :  { %2091 = vmatprep.subr.bf16.mxu0 %v3474_v17  ;;  %v3522_v49 = vld [vmem:[#allocation8 + $0x244] ss:$24 sps:$4 sm:$0xff]   ;;  %v3520_v51 = vld [vmem:[#allocation8 + $0x4b4] ss:$24 sps:$4 sm:$0xff]   ;;  %v3527_v52 = vld [vmem:[#allocation8 + $0x240] ss:$24 sps:$4 sm:$0xff]  }
  0x91   :  { %v3528_v53 = vld [vmem:[#allocation8 + $0x274] ss:$24 sps:$4 sm:$0xff]   ;;  %v3518_v54 = vld [vmem:[#allocation8 + $0x4b0] ss:$24 sps:$4 sm:$0xff]   ;;  %v3526_v55 = vld [vmem:[#allocation8 + $0x4e4] ss:$24 sps:$4 sm:$0xff]  }
  0x92   :  { %v3533_v56 = vld [vmem:[#allocation8 + $0x270] ss:$24 sps:$4 sm:$0xff]   ;;  %v3524_v57 = vld [vmem:[#allocation8 + $0x4e0] ss:$24 sps:$4 sm:$0xff]   ;;  %v3532_v58 = vld [vmem:[#allocation8 + $0x514] ss:$24 sps:$4 sm:$0xff]  }
  0x93   :  { %3002 = vmatmul.mubr.msk.bf16.vlgmr.msra.gmra.mrb[8].mxu1 %vm184_vm0, %v115_v3  ;;  %2092 = vmatpush1.bf16.msra.mxu0 %v3479_v20  ;;  %v3530_v59 = vld [vmem:[#allocation8 + $0x510] ss:$24 sps:$4 sm:$0xff]   ;;  %v3534_v60 = vld [vmem:[#allocation8 + $0x2a4] ss:$24 sps:$4 sm:$0xff]   ;;  %v3536_v62 = vld [vmem:[#allocation8 + $0x540] ss:$24 sps:$4 sm:$0xff]  }
  0x94   :  { %2125 = vmatpush1.bf16.msra.mxu1 %v3464_v18  ;;  %2093 = vmatprep.subr.bf16.mxu0 %v3480_v21  ;;  %v3538_v61 = vld [vmem:[#allocation8 + $0x544] ss:$24 sps:$4 sm:$0xff]   ;;  %v3539_v63 = vld [vmem:[#allocation8 + $0x2a0] ss:$24 sps:$4 sm:$0xff]   ;;  %v3540_v0 = vld [vmem:[#allocation8 + $0x2d4] ss:$24 sps:$4 sm:$0xff]  }
  0x95   :  { %2126 = vmatprep.subr.bf16.mxu1 %v3472_v19  ;;  %v3544_v1 = vld [vmem:[#allocation8 + $0x574] ss:$24 sps:$4 sm:$0xff]   ;;  %v3542_v2 = vld [vmem:[#allocation8 + $0x570] ss:$24 sps:$4 sm:$0xff]   ;;  %v3548_v4 = vld [vmem:[#allocation8 + $0x5a4] ss:$24 sps:$4 sm:$0xff]  }
  0x96   :  { %v3545_v3 = vld [vmem:[#allocation8 + $0x2d0] ss:$24 sps:$4 sm:$0xff]   ;;  %v3551_v5 = vld [vmem:[#allocation8 + $0xc] ss:$24 sps:$4 sm:$0xff]   ;;  %v3546_v6 = vld [vmem:[#allocation8 + $0x5a0] ss:$24 sps:$4 sm:$0xff]  }
  0x97   :  { %2094 = vmatpush1.bf16.msra.mxu0 %v3485_v24  ;;  %v3554_v7 = vld [vmem:[#allocation8 + $0x5d4] ss:$24 sps:$4 sm:$0xff]   ;;  %v3552_v8 = vld [vmem:[#allocation8 + $0x5d0] ss:$24 sps:$4 sm:$0xff]   ;;  %v3560_v9 = vld [vmem:[#allocation8 + $0x604] ss:$24 sps:$4 sm:$0xff]  }
  0x98   :  { %2127 = vmatpush1.bf16.msra.mxu1 %v3470_v22  ;;  %2095 = vmatprep.subr.bf16.mxu0 %v3486_v25  ;;  %v4262_v11 = vshrl.u32 %v124_v10, 7  ;;  %v4265_v13 = vld [vmem:[#allocation7] sm:$0x3f]  ;;  %v3588_v10 = vld [vmem:[#allocation8 + $0x6f0] ss:$24 sps:$4 sm:$0xff]   ;;  %s4090_s14 = scalar_lea.vmem %s2983_s13, 128 }
  0x99   :  { %2128 = vmatprep.subr.bf16.mxu1 %v3478_v23  ;;  %p4091_p0 = scmp.ne.s32.totalorder %s2983_s13, %s4090_s14  ;;  %p4096_p2 = scmp.lt.s32.totalorder %s4090_s14, %s4090_s14 }
  0x9a   :  { %v126_v12 = vsub.s32 0, %v4262_v11  ;;  %v130_v14 = vsub.s32 1, %v4262_v11  ;;  %v134_v20 = vsub.s32 2, %v4262_v11  ;;  %v138_v23 = vsub.s32 3, %v4262_v11 }
  0x9b   :  { %2096 = vmatpush1.bf16.msra.mxu0 %v3491_v28  ;;  %p4097_p3 = por %p4096_p2, %p4095_p1 }
  0x9c   :  { %2129 = vmatpush1.bf16.msra.mxu1 %v3476_v26  ;;  %2097 = vmatprep.subr.bf16.mxu0 %v3492_v29  ;;  %v127_v15 = vrot.slane %v4265_v13, %v126_v12  ;;  %v131_v16 = vrot.slane %v4265_v13, %v130_v14  ;;  %v3549_v29 = vld [vmem:[#allocation8 + $0x8] ss:$24 sps:$4 sm:$0xff]  }
  0x9d   :  { %2130 = vmatprep.subr.bf16.mxu1 %v3484_v27  ;;  %v135_v27 = vrot.slane %v4265_v13, %v134_v20  ;;  %p4098_p4 = pnand %p4097_p3, %p4091_p0 }
  0x9f   :  { %2098 = vmatpush1.bf16.msra.mxu0 %v3497_v32  ;;  %v3557_v32 = vld [vmem:[#allocation8 + $0x3c] ss:$24 sps:$4 sm:$0xff]  }
  0xa0   :  { %2131 = vmatpush1.bf16.msra.mxu1 %v3482_v30  ;;  %2099 = vmatprep.subr.bf16.mxu0 %v3498_v33  ;;  %v139_v30 = vrot.slane %v4265_v13, %v138_v23 }
  0xa1   :  { %2132 = vmatprep.subr.bf16.mxu1 %v3490_v31 }
  0xa3   :  { %2100 = vmatpush1.bf16.msra.mxu0 %v3503_v36 }
  0xa4   :  { %2133 = vmatpush1.bf16.msra.mxu1 %v3488_v34  ;;  %2101 = vmatprep.subr.bf16.mxu0 %v3504_v39  ;;  %v146_v39 = vsub.s32 5, %v4262_v11 }
  0xa5   :  { %2134 = vmatprep.subr.bf16.mxu1 %v3496_v35 }
  0xa7   :  { %2102 = vmatpush1.bf16.msra.mxu0 %v3509_v40 }
  0xa8   :  { %2135 = vmatpush1.bf16.msra.mxu1 %v3494_v37  ;;  %2103 = vmatprep.subr.bf16.mxu0 %v3510_v41 }
  0xa9   :  { %2136 = vmatprep.subr.bf16.mxu1 %v3502_v38  ;;  %v3555_v38 = vld [vmem:[#allocation8 + $0x38] ss:$24 sps:$4 sm:$0xff]  }
  0xab   :  { %2104 = vmatpush1.bf16.msra.mxu0 %v3515_v44 }
  0xac   :  { %2137 = vmatpush1.bf16.msra.mxu1 %v3500_v42  ;;  %2105 = vmatprep.subr.bf16.mxu0 %v3516_v45  ;;  %v3563_v42 = vld [vmem:[#allocation8 + $0x6c] ss:$24 sps:$4 sm:$0xff]   ;;  %v3558_v45 = vld [vmem:[#allocation8 + $0x600] ss:$24 sps:$4 sm:$0xff]  }
  0xad   :  { %2138 = vmatprep.subr.bf16.mxu1 %v3508_v43 }
  0xaf   :  { %2106 = vmatpush1.bf16.msra.mxu0 %v3521_v48 }
  0xb0   :  { %2139 = vmatpush1.bf16.msra.mxu1 %v3506_v46  ;;  %2107 = vmatprep.subr.bf16.mxu0 %v3522_v49  ;;  %v3561_v46 = vld [vmem:[#allocation8 + $0x68] ss:$24 sps:$4 sm:$0xff]   ;;  %v3566_v49 = vld [vmem:[#allocation8 + $0x634] ss:$24 sps:$4 sm:$0xff]  }
  0xb1   :  { %2140 = vmatprep.subr.bf16.mxu1 %v3514_v47  ;;  %v147_v47 = vrot.slane %v4265_v13, %v146_v39 }
  0xb3   :  { %2108 = vmatpush1.bf16.msra.mxu0 %v3527_v52 }
  0xb4   :  { %2141 = vmatpush1.bf16.msra.mxu1 %v3512_v50  ;;  %2109 = vmatprep.subr.bf16.mxu0 %v3528_v53  ;;  %v3569_v50 = vld [vmem:[#allocation8 + $0x9c] ss:$24 sps:$4 sm:$0xff]   ;;  %v3564_v53 = vld [vmem:[#allocation8 + $0x630] ss:$24 sps:$4 sm:$0xff]  }
  0xb5   :  { %2142 = vmatprep.subr.bf16.mxu1 %v3520_v51 }
  0xb7   :  { %2110 = vmatpush1.bf16.msra.mxu0 %v3533_v56 }
  0xb8   :  { %2143 = vmatpush1.bf16.msra.mxu1 %v3518_v54  ;;  %2111 = vmatprep.subr.bf16.mxu0 %v3534_v60  ;;  %v3567_v54 = vld [vmem:[#allocation8 + $0x98] ss:$24 sps:$4 sm:$0xff]  }
  0xb9   :  { %2144 = vmatprep.subr.bf16.mxu1 %v3526_v55 }
  0xbb   :  { %2112 = vmatpush1.bf16.msra.mxu0 %v3539_v63 }
  0xbc   :  { %2145 = vmatpush1.bf16.msra.mxu1 %v3524_v57  ;;  %2113 = vmatprep.subr.bf16.mxu0 %v3540_v0  ;;  %v3572_v57 = vld [vmem:[#allocation8 + $0x664] ss:$24 sps:$4 sm:$0xff]   ;;  %v3578_v0 = vld [vmem:[#allocation8 + $0x694] ss:$24 sps:$4 sm:$0xff]  }
  0xbd   :  { %2146 = vmatprep.subr.bf16.mxu1 %v3532_v58  ;;  %v3575_v58 = vld [vmem:[#allocation8 + $0xcc] ss:$24 sps:$4 sm:$0xff]  }
  0xbf   :  { %2114 = vmatpush1.bf16.msra.mxu0 %v3545_v3  ;;  %v3579_v3 = vld [vmem:[#allocation8 + $0xf8] ss:$24 sps:$4 sm:$0xff]  }
  0xc0   :  { %2147 = vmatpush1.bf16.msra.mxu1 %v3530_v59  ;;  %2206 = vmatprep.subr.bf16.mxu0 %v3551_v5  ;;  %v3587_v5 = vld [vmem:[#allocation8 + $0x12c] ss:$24 sps:$4 sm:$0xff]  }
  0xc1   :  { %2148 = vmatprep.subr.bf16.mxu1 %v3538_v61  ;;  %v3570_v61 = vld [vmem:[#allocation8 + $0x660] ss:$24 sps:$4 sm:$0xff]  }
  0xc4   :  { %2149 = vmatpush1.bf16.msra.mxu1 %v3536_v62  ;;  %v3573_v62 = vld [vmem:[#allocation8 + $0xc8] ss:$24 sps:$4 sm:$0xff]  }
  0xc5   :  { %2150 = vmatprep.subr.bf16.mxu1 %v3544_v1  ;;  %v3581_v1 = vld [vmem:[#allocation8 + $0xfc] ss:$24 sps:$4 sm:$0xff]  }
  0xc8   :  { %2151 = vmatpush1.bf16.msra.mxu1 %v3542_v2  ;;  %v3576_v2 = vld [vmem:[#allocation8 + $0x690] ss:$24 sps:$4 sm:$0xff]  }
  0xc9   :  { %2152 = vmatprep.subr.bf16.mxu1 %v3548_v4  ;;  %v3584_v4 = vld [vmem:[#allocation8 + $0x6c4] ss:$24 sps:$4 sm:$0xff]  }
  0xcc   :  { %2153 = vmatpush1.bf16.msra.mxu1 %v3546_v6  ;;  %v3582_v6 = vld [vmem:[#allocation8 + $0x6c0] ss:$24 sps:$4 sm:$0xff]  }
  0xcd   :  { %2154 = vmatprep.subr.bf16.mxu1 %v3554_v7  ;;  %v3585_v7 = vld [vmem:[#allocation8 + $0x128] ss:$24 sps:$4 sm:$0xff]  }
  0xd0   :  { %2155 = vmatpush1.bf16.msra.mxu1 %v3552_v8  ;;  %v3590_v8 = vld [vmem:[#allocation8 + $0x6f4] ss:$24 sps:$4 sm:$0xff]  }
  0xd1   :  { %2165 = vmatprep.subr.bf16.mxu1 %v3560_v9  ;;  %v3593_v9 = vld [vmem:[#allocation8 + $0x15c] ss:$24 sps:$4 sm:$0xff]  }
 0x156   :  { %v222_v17 = vpop.f32.mrb[0].mxu1 }
 0x157   :  { %v223_v18 = vadd.f32 %v222_v17, %v127_v15  ;;  %v224_v19 = vpop.f32.mrb[1].mxu1  ;;  %v3591_v15 = vld [vmem:[#allocation8 + $0x158] ss:$24 sps:$4 sm:$0xff]   ;;  %v3599_v17 = vld [vmem:[#allocation8 + $0x18c] ss:$24 sps:$4 sm:$0xff]  }
 0x158   :  { %v225_v21 = vadd.f32 %v224_v19, %v131_v16  ;;  %v226_v22 = vpop.f32.mrb[2].mxu1  ;;  %v3596_v16 = vld [vmem:[#allocation8 + $0x724] ss:$24 sps:$4 sm:$0xff]   ;;  %v3597_v19 = vld [vmem:[#allocation8 + $0x188] ss:$24 sps:$4 sm:$0xff]  }
 0x159   :  { %v311_v24 = vmax.f32 %v223_v18, 0.0  ;;  %v227_v25 = vpop.f32.mrb[3].mxu1  ;;  %v3594_v18 = vld [vmem:[#allocation8 + $0x720] ss:$24 sps:$4 sm:$0xff]   ;;  %v3605_v22 = vld [vmem:[#allocation8 + $0x1bc] ss:$24 sps:$4 sm:$0xff]  }
 0x15a   :  { %v312_v26 = vmax.f32 %v225_v21, 0.0  ;;  %v3602_v21 = vld [vmem:[#allocation8 + $0x754] ss:$24 sps:$4 sm:$0xff]   ;;  %v3603_v25 = vld [vmem:[#allocation8 + $0x1b8] ss:$24 sps:$4 sm:$0xff]  }
 0x15b   :  { %v4284_v31 = vpack.c.bf16 %v311_v24, %v311_v24  ;;  %v3600_v24 = vld [vmem:[#allocation8 + $0x750] ss:$24 sps:$4 sm:$0xff]  }
 0x15c   :  { %v4279_v28 = vpack.c.bf16 %v312_v26, %v312_v26  ;;  %v3608_v26 = vld [vmem:[#allocation8 + $0x784] ss:$24 sps:$4 sm:$0xff]  }
 0x15e   :  { %v263_v33 = vpop.f32.mrb[4].mxu1  ;;  %2115 = vmatprep.mubr.bf16.mxu0 %v4279_v28 }
 0x15f   :  { %v264_v34 = vadd.f32 %v263_v33, %v135_v27  ;;  %v265_v35 = vpop.f32.mrb[5].mxu1  ;;  %2116 = vmatmul.mubr.bf16.vlgmr.msra.gmra.mrb[0].mxu0 %v4284_v31  ;;  %v3611_v27 = vld [vmem:[#allocation8 + $0x1ec] ss:$24 sps:$4 sm:$0xff]   ;;  %v3617_v33 = vld [vmem:[#allocation8 + $0x21c] ss:$24 sps:$4 sm:$0xff]  }
 0x160   :  { %v266_v36 = vadd.f32 %v265_v35, %v139_v30  ;;  %2207 = vmatpush1.bf16.msra.mxu0 %v3549_v29  ;;  %v267_v37 = vpop.f32.mrb[6].mxu1  ;;  %2238 = vmatprep.mubr.bf16.mxu0 %v4279_v28  ;;  %v3606_v29 = vld [vmem:[#allocation8 + $0x780] ss:$24 sps:$4 sm:$0xff]  }
 0x161   :  { %v313_v40 = vmax.f32 %v264_v34, 0.0  ;;  %v268_v41 = vpop.f32.mrb[7].mxu1  ;;  %2208 = vmatprep.subr.bf16.mxu0 %v3557_v32  ;;  %v3609_v30 = vld [vmem:[#allocation8 + $0x1e8] ss:$24 sps:$4 sm:$0xff]   ;;  %v3614_v32 = vld [vmem:[#allocation8 + $0x7b4] ss:$24 sps:$4 sm:$0xff]  }
 0x162   :  { %v314_v43 = vmax.f32 %v266_v36, 0.0  ;;  %v3612_v34 = vld [vmem:[#allocation8 + $0x7b0] ss:$24 sps:$4 sm:$0xff]   ;;  %v3620_v36 = vld [vmem:[#allocation8 + $0x7e4] ss:$24 sps:$4 sm:$0xff]  }
 0x163   :  { %v4295_v48 = vpack.c.bf16 %v313_v40, %v313_v40  ;;  %v3615_v35 = vld [vmem:[#allocation8 + $0x218] ss:$24 sps:$4 sm:$0xff]   ;;  %v3623_v37 = vld [vmem:[#allocation8 + $0x24c] ss:$24 sps:$4 sm:$0xff]   ;;  %v3621_v40 = vld [vmem:[#allocation8 + $0x248] ss:$24 sps:$4 sm:$0xff]  }
 0x164   :  { %v4290_v44 = vpack.c.bf16 %v314_v43, %v314_v43  ;;  %2209 = vmatpush1.bf16.msra.mxu0 %v3555_v38  ;;  %v3618_v38 = vld [vmem:[#allocation8 + $0x7e0] ss:$24 sps:$4 sm:$0xff]   ;;  %v3626_v41 = vld [vmem:[#allocation8 + $0x814] ss:$24 sps:$4 sm:$0xff]   ;;  %v3624_v43 = vld [vmem:[#allocation8 + $0x810] ss:$24 sps:$4 sm:$0xff]  }
 0x165   :  { %2210 = vmatprep.subr.bf16.mxu0 %v3563_v42  ;;  %v3629_v42 = vld [vmem:[#allocation8 + $0x27c] ss:$24 sps:$4 sm:$0xff]  }
 0x166   :  { %2156 = vmatprep.mubr.bf16.mxu1 %v4290_v44  ;;  %v4298_v51 = vpop.f32.mrb[8].mxu1 }
 0x167   :  { %2157 = vmatmul.mubr.bf16.vlgmr.msra.gmra.mrb[12].mxu1 %v4295_v48  ;;  %v306_v52 = vpop.f32.mrb[9].mxu1 }
 0x168   :  { %2166 = vmatpush1.bf16.msra.mxu1 %v3558_v45  ;;  %2211 = vmatpush1.bf16.msra.mxu0 %v3561_v46  ;;  %v307_v55 = vadd.f32 %v306_v52, %v147_v47  ;;  %v308_v56 = vpop.f32.mrb[10].mxu1  ;;  %v3627_v45 = vld [vmem:[#allocation8 + $0x278] ss:$24 sps:$4 sm:$0xff]   ;;  %v3632_v46 = vld [vmem:[#allocation8 + $0x844] ss:$24 sps:$4 sm:$0xff]  }
 0x169   :  { %2167 = vmatprep.subr.bf16.mxu1 %v3566_v49  ;;  %2212 = vmatprep.subr.bf16.mxu0 %v3569_v50  ;;  %v309_v59 = vpop.f32.mrb[11].mxu1  ;;  %v3635_v47 = vld [vmem:[#allocation8 + $0x2ac] ss:$24 sps:$4 sm:$0xff]   ;;  %v142_v49 = vsub.s32 4, %v4262_v11  ;;  %v3630_v50 = vld [vmem:[#allocation8 + $0x840] ss:$24 sps:$4 sm:$0xff]  }
 0x16a   :  { %v316_v60 = vmax.f32 %v307_v55, 0.0  ;;  %v3633_v52 = vld [vmem:[#allocation8 + $0x2a8] ss:$24 sps:$4 sm:$0xff]   ;;  %v3647_v59 = vld [vmem:[#allocation8 + $0x30c] ss:$24 sps:$4 sm:$0xff]  }
 0x16b   :  { %v143_v55 = vrot.slane %v4265_v13, %v142_v49  ;;  %v3636_v56 = vld [vmem:[#allocation8 + $0x870] ss:$24 sps:$4 sm:$0xff]   ;;  %v3291_v11 = vld [vmem:[#allocation13] ss:$0 sm:$0xff] }
 0x16c   :  { %2168 = vmatpush1.bf16.msra.mxu1 %v3564_v53  ;;  %2213 = vmatpush1.bf16.msra.mxu0 %v3567_v54  ;;  %v4301_v63 = vpack.c.bf16 %v316_v60, %v316_v60  ;;  %v3638_v53 = vld [vmem:[#allocation8 + $0x874] ss:$24 sps:$4 sm:$0xff]   ;;  %v3648_v13 = vld [vmem:[#allocation8 + $0x8d0] ss:$24 sps:$4 sm:$0xff]  }
 0x16d   :  { %2169 = vmatprep.subr.bf16.mxu1 %v3572_v57  ;;  %2214 = vmatprep.subr.bf16.mxu0 %v3575_v58  ;;  %v3641_v54 = vld [vmem:[#allocation8 + $0x2dc] ss:$24 sps:$4 sm:$0xff]   ;;  %v3639_v57 = vld [vmem:[#allocation8 + $0x2d8] ss:$24 sps:$4 sm:$0xff]   ;;  %v305_v60 = vadd.f32 %v4298_v51, %v143_v55 }
 0x16e   :  { %2197 = vmatprep.mubr.bf16.mxu1 %v4301_v63  ;;  %v3644_v58 = vld [vmem:[#allocation8 + $0x8a4] ss:$24 sps:$4 sm:$0xff]   ;;  %v3659_v51 = vld [vmem:[#allocation8 + $0x14] ss:$24 sps:$4 sm:$0xff]   ;;  %v3711_v55 = vld [vmem:[#allocation8 + $0x1c0] ss:$24 sps:$4 sm:$0xff]  }
 0x170   :  { %2170 = vmatpush1.bf16.msra.mxu1 %v3570_v61  ;;  %2215 = vmatpush1.bf16.msra.mxu0 %v3573_v62  ;;  %v3642_v61 = vld [vmem:[#allocation8 + $0x8a0] ss:$24 sps:$4 sm:$0xff]  }
 0x171   :  { %2171 = vmatprep.subr.bf16.mxu1 %v3578_v0  ;;  %2216 = vmatprep.subr.bf16.mxu0 %v3581_v1  ;;  %v3645_v62 = vld [vmem:[#allocation8 + $0x308] ss:$24 sps:$4 sm:$0xff]   ;;  %v3650_v0 = vld [vmem:[#allocation8 + $0x8d4] ss:$24 sps:$4 sm:$0xff]  }
 0x172   :  { %v3653_v1 = vld [vmem:[#allocation8 + $0x33c] ss:$24 sps:$4 sm:$0xff]  }
 0x174   :  { %2172 = vmatpush1.bf16.msra.mxu1 %v3576_v2  ;;  %2217 = vmatpush1.bf16.msra.mxu0 %v3579_v3  ;;  %v315_v2 = vmax.f32 %v305_v60, 0.0  ;;  %v3651_v3 = vld [vmem:[#allocation8 + $0x338] ss:$24 sps:$4 sm:$0xff]   ;;  %v3722_v60 = vld [vmem:[#allocation8 + $0x57c] ss:$24 sps:$4 sm:$0xff]  }
 0x175   :  { %2173 = vmatprep.subr.bf16.mxu1 %v3584_v4  ;;  %2218 = vmatprep.subr.bf16.mxu0 %v3587_v5  ;;  %v3656_v4 = vld [vmem:[#allocation8 + $0x36c] ss:$24 sps:$4 sm:$0xff]  }
 0x176   :  { %v4311_v5 = vpack.c.bf16 %v315_v2, %v315_v2  ;;  %v3731_v2 = vld [vmem:[#allocation8 + $0x254] ss:$24 sps:$4 sm:$0xff]  }
 0x178   :  { %2174 = vmatpush1.bf16.msra.mxu1 %v3582_v6  ;;  %2219 = vmatpush1.bf16.msra.mxu0 %v3585_v7  ;;  %v3654_v6 = vld [vmem:[#allocation8 + $0x368] ss:$24 sps:$4 sm:$0xff]  }
 0x179   :  { %2175 = vmatprep.subr.bf16.mxu1 %v3590_v8  ;;  %2220 = vmatprep.subr.bf16.mxu0 %v3593_v9  ;;  %v3657_v7 = vld [vmem:[#allocation8 + $0x10] ss:$24 sps:$4 sm:$0xff]   ;;  %v3662_v8 = vld [vmem:[#allocation8 + $0x39c] ss:$24 sps:$4 sm:$0xff]  }
 0x17a   :  { %v3665_v9 = vld [vmem:[#allocation8 + $0x44] ss:$24 sps:$4 sm:$0xff]  }
 0x17c   :  { %2176 = vmatpush1.bf16.msra.mxu1 %v3588_v10  ;;  %2221 = vmatpush1.bf16.msra.mxu0 %v3591_v15  ;;  %v3660_v10 = vld [vmem:[#allocation8 + $0x398] ss:$24 sps:$4 sm:$0xff]  }
 0x17d   :  { %2177 = vmatprep.subr.bf16.mxu1 %v3596_v16  ;;  %2222 = vmatprep.subr.bf16.mxu0 %v3599_v17  ;;  %v3663_v15 = vld [vmem:[#allocation8 + $0x40] ss:$24 sps:$4 sm:$0xff]   ;;  %v3668_v16 = vld [vmem:[#allocation8 + $0x3cc] ss:$24 sps:$4 sm:$0xff]  }
 0x17e   :  { %v3671_v17 = vld [vmem:[#allocation8 + $0x74] ss:$24 sps:$4 sm:$0xff]  }
 0x180   :  { %2178 = vmatpush1.bf16.msra.mxu1 %v3594_v18  ;;  %2223 = vmatpush1.bf16.msra.mxu0 %v3597_v19  ;;  %v3666_v18 = vld [vmem:[#allocation8 + $0x3c8] ss:$24 sps:$4 sm:$0xff]  }
 0x181   :  { %2179 = vmatprep.subr.bf16.mxu1 %v3602_v21  ;;  %2224 = vmatprep.subr.bf16.mxu0 %v3605_v22  ;;  %v3669_v19 = vld [vmem:[#allocation8 + $0x70] ss:$24 sps:$4 sm:$0xff]   ;;  %v3674_v21 = vld [vmem:[#allocation8 + $0x3fc] ss:$24 sps:$4 sm:$0xff]  }
 0x182   :  { %v3677_v22 = vld [vmem:[#allocation8 + $0xa4] ss:$24 sps:$4 sm:$0xff]  }
 0x184   :  { %2180 = vmatpush1.bf16.msra.mxu1 %v3600_v24  ;;  %2225 = vmatpush1.bf16.msra.mxu0 %v3603_v25  ;;  %v3672_v24 = vld [vmem:[#allocation8 + $0x3f8] ss:$24 sps:$4 sm:$0xff]  }
 0x185   :  { %2181 = vmatprep.subr.bf16.mxu1 %v3608_v26  ;;  %2226 = vmatprep.subr.bf16.mxu0 %v3611_v27  ;;  %v3675_v25 = vld [vmem:[#allocation8 + $0xa0] ss:$24 sps:$4 sm:$0xff]   ;;  %v3680_v26 = vld [vmem:[#allocation8 + $0x42c] ss:$24 sps:$4 sm:$0xff]  }
 0x186   :  { %v3678_v27 = vld [vmem:[#allocation8 + $0x428] ss:$24 sps:$4 sm:$0xff]  }
 0x188   :  { %2182 = vmatpush1.bf16.msra.mxu1 %v3606_v29  ;;  %2227 = vmatpush1.bf16.msra.mxu0 %v3609_v30  ;;  %v3681_v29 = vld [vmem:[#allocation8 + $0xd0] ss:$24 sps:$4 sm:$0xff]   ;;  %v3686_v30 = vld [vmem:[#allocation8 + $0x45c] ss:$24 sps:$4 sm:$0xff]  }
 0x189   :  { %2183 = vmatprep.subr.bf16.mxu1 %v3614_v32  ;;  %2228 = vmatprep.subr.bf16.mxu0 %v3617_v33  ;;  %v3689_v32 = vld [vmem:[#allocation8 + $0x104] ss:$24 sps:$4 sm:$0xff]   ;;  %v3684_v33 = vld [vmem:[#allocation8 + $0x458] ss:$24 sps:$4 sm:$0xff]  }
 0x18c   :  { %2184 = vmatpush1.bf16.msra.mxu1 %v3612_v34  ;;  %2229 = vmatpush1.bf16.msra.mxu0 %v3615_v35  ;;  %v3687_v34 = vld [vmem:[#allocation8 + $0x100] ss:$24 sps:$4 sm:$0xff]   ;;  %v3692_v35 = vld [vmem:[#allocation8 + $0x48c] ss:$24 sps:$4 sm:$0xff]  }
 0x18d   :  { %2185 = vmatprep.subr.bf16.mxu1 %v3620_v36  ;;  %2230 = vmatprep.subr.bf16.mxu0 %v3623_v37  ;;  %v3695_v36 = vld [vmem:[#allocation8 + $0x134] ss:$24 sps:$4 sm:$0xff]   ;;  %v3690_v37 = vld [vmem:[#allocation8 + $0x488] ss:$24 sps:$4 sm:$0xff]  }
 0x190   :  { %2186 = vmatpush1.bf16.msra.mxu1 %v3618_v38  ;;  %2231 = vmatpush1.bf16.msra.mxu0 %v3621_v40  ;;  %v3693_v38 = vld [vmem:[#allocation8 + $0x130] ss:$24 sps:$4 sm:$0xff]   ;;  %v3698_v40 = vld [vmem:[#allocation8 + $0x4bc] ss:$24 sps:$4 sm:$0xff]  }
 0x191   :  { %2187 = vmatprep.subr.bf16.mxu1 %v3626_v41  ;;  %2232 = vmatprep.subr.bf16.mxu0 %v3629_v42  ;;  %v3701_v41 = vld [vmem:[#allocation8 + $0x164] ss:$24 sps:$4 sm:$0xff]   ;;  %v3696_v42 = vld [vmem:[#allocation8 + $0x4b8] ss:$24 sps:$4 sm:$0xff]  }
 0x194   :  { %2188 = vmatpush1.bf16.msra.mxu1 %v3624_v43  ;;  %2233 = vmatpush1.bf16.msra.mxu0 %v3627_v45  ;;  %v3699_v43 = vld [vmem:[#allocation8 + $0x160] ss:$24 sps:$4 sm:$0xff]   ;;  %v3704_v45 = vld [vmem:[#allocation8 + $0x4ec] ss:$24 sps:$4 sm:$0xff]  }
 0x195   :  { %2189 = vmatprep.subr.bf16.mxu1 %v3632_v46  ;;  %2234 = vmatprep.subr.bf16.mxu0 %v3635_v47  ;;  %v3707_v46 = vld [vmem:[#allocation8 + $0x194] ss:$24 sps:$4 sm:$0xff]   ;;  %v3702_v47 = vld [vmem:[#allocation8 + $0x4e8] ss:$24 sps:$4 sm:$0xff]  }
 0x198   :  { %2190 = vmatpush1.bf16.msra.mxu1 %v3630_v50  ;;  %2235 = vmatpush1.bf16.msra.mxu0 %v3633_v52  ;;  %v3705_v50 = vld [vmem:[#allocation8 + $0x190] ss:$24 sps:$4 sm:$0xff]   ;;  %v3710_v52 = vld [vmem:[#allocation8 + $0x51c] ss:$24 sps:$4 sm:$0xff]  }
 0x199   :  { %2191 = vmatprep.subr.bf16.mxu1 %v3638_v53  ;;  %2236 = vmatprep.subr.bf16.mxu0 %v3641_v54  ;;  %v3713_v53 = vld [vmem:[#allocation8 + $0x1c4] ss:$24 sps:$4 sm:$0xff]   ;;  %v3708_v54 = vld [vmem:[#allocation8 + $0x518] ss:$24 sps:$4 sm:$0xff]  }
 0x19c   :  { %2192 = vmatpush1.bf16.msra.mxu1 %v3636_v56  ;;  %2237 = vmatpush1.bf16.msra.mxu0 %v3639_v57  ;;  %v3716_v56 = vld [vmem:[#allocation8 + $0x54c] ss:$24 sps:$4 sm:$0xff]  }
 0x19d   :  { %2193 = vmatprep.subr.bf16.mxu1 %v3644_v58  ;;  %2247 = vmatprep.subr.bf16.mxu0 %v3647_v59  ;;  %v3719_v57 = vld [vmem:[#allocation8 + $0x1f4] ss:$24 sps:$4 sm:$0xff]   ;;  %v3714_v58 = vld [vmem:[#allocation8 + $0x548] ss:$24 sps:$4 sm:$0xff]  }
 0x19e   :  { %v3717_v59 = vld [vmem:[#allocation8 + $0x1f0] ss:$24 sps:$4 sm:$0xff]  }
 0x19f   :  { %2239 = vmatmul.mubr.bf16.vlgmr.msra.gmra.mrb[4].mxu0 %v4284_v31 }
 0x1a0   :  { %2194 = vmatpush1.bf16.msra.mxu1 %v3642_v61  ;;  %2248 = vmatpush1.bf16.msra.mxu0 %v3645_v62  ;;  %v3725_v61 = vld [vmem:[#allocation8 + $0x224] ss:$24 sps:$4 sm:$0xff]   ;;  %v3720_v62 = vld [vmem:[#allocation8 + $0x578] ss:$24 sps:$4 sm:$0xff]  }
 0x1a1   :  { %2279 = vmatprep.mubr.bf16.mxu0 %v4290_v44  ;;  %2195 = vmatprep.subr.bf16.mxu1 %v3650_v0  ;;  %v3723_v0 = vld [vmem:[#allocation8 + $0x220] ss:$24 sps:$4 sm:$0xff]  }
 0x1a2   :  { %2249 = vmatprep.subr.bf16.mxu0 %v3653_v1  ;;  %v3728_v1 = vld [vmem:[#allocation8 + $0x5ac] ss:$24 sps:$4 sm:$0xff]  }
 0x1a4   :  { %2196 = vmatpush1.bf16.msra.mxu1 %v3648_v13  ;;  %2250 = vmatpush1.bf16.msra.mxu0 %v3651_v3  ;;  %v3726_v13 = vld [vmem:[#allocation8 + $0x5a8] ss:$24 sps:$4 sm:$0xff]  }
 0x1a5   :  { %2251 = vmatprep.subr.bf16.mxu0 %v3656_v4  ;;  %2329 = vmatprep.subr.bf16.mxu1 %v3659_v51  ;;  %v3729_v3 = vld [vmem:[#allocation8 + $0x250] ss:$24 sps:$4 sm:$0xff]   ;;  %v3734_v4 = vld [vmem:[#allocation8 + $0x5dc] ss:$24 sps:$4 sm:$0xff]  }
 0x1a6   :  { %v3737_v51 = vld [vmem:[#allocation8 + $0x284] ss:$24 sps:$4 sm:$0xff]  }
 0x1a7   :  { %2198 = vmatmul.mubr.bf16.vlgmr.msra.gmra.mrb[12].mxu1 %v4311_v5 }
 0x1a8   :  { %2252 = vmatpush1.bf16.msra.mxu0 %v3654_v6  ;;  %2330 = vmatpush1.bf16.msra.mxu1 %v3657_v7  ;;  %v3732_v6 = vld [vmem:[#allocation8 + $0x5d8] ss:$24 sps:$4 sm:$0xff]  }
 0x1a9   :  { %2361 = vmatprep.mubr.bf16.mxu1 %v4279_v28  ;;  %2253 = vmatprep.subr.bf16.mxu0 %v3662_v8  ;;  %v3683_v28 = vld [vmem:[#allocation8 + $0xd4] ss:$24 sps:$4 sm:$0xff]   ;;  %v3735_v7 = vld [vmem:[#allocation8 + $0x280] ss:$24 sps:$4 sm:$0xff]  }
 0x1aa   :  { %2331 = vmatprep.subr.bf16.mxu1 %v3665_v9  ;;  %v3740_v8 = vld [vmem:[#allocation8 + $0x60c] ss:$24 sps:$4 sm:$0xff]  }
 0x1ab   :  { %v3743_v9 = vld [vmem:[#allocation8 + $0x2b4] ss:$24 sps:$4 sm:$0xff]  }
 0x1ac   :  { %2254 = vmatpush1.bf16.msra.mxu0 %v3660_v10  ;;  %2332 = vmatpush1.bf16.msra.mxu1 %v3663_v15  ;;  %v3738_v10 = vld [vmem:[#allocation8 + $0x608] ss:$24 sps:$4 sm:$0xff]  }
 0x1ad   :  { %2255 = vmatprep.subr.bf16.mxu0 %v3668_v16  ;;  %2333 = vmatprep.subr.bf16.mxu1 %v3671_v17  ;;  %v3741_v15 = vld [vmem:[#allocation8 + $0x2b0] ss:$24 sps:$4 sm:$0xff]   ;;  %v3746_v16 = vld [vmem:[#allocation8 + $0x63c] ss:$24 sps:$4 sm:$0xff]  }
 0x1ae   :  { %v3749_v17 = vld [vmem:[#allocation8 + $0x2e4] ss:$24 sps:$4 sm:$0xff]  }
 0x1b0   :  { %2256 = vmatpush1.bf16.msra.mxu0 %v3666_v18  ;;  %2334 = vmatpush1.bf16.msra.mxu1 %v3669_v19  ;;  %v3744_v18 = vld [vmem:[#allocation8 + $0x638] ss:$24 sps:$4 sm:$0xff]  }
 0x1b1   :  { %2257 = vmatprep.subr.bf16.mxu0 %v3674_v21  ;;  %2335 = vmatprep.subr.bf16.mxu1 %v3677_v22  ;;  %v3747_v19 = vld [vmem:[#allocation8 + $0x2e0] ss:$24 sps:$4 sm:$0xff]   ;;  %v3752_v21 = vld [vmem:[#allocation8 + $0x66c] ss:$24 sps:$4 sm:$0xff]  }
 0x1b2   :  { %v3755_v22 = vld [vmem:[#allocation8 + $0x314] ss:$24 sps:$4 sm:$0xff]  }
 0x1b4   :  { %2258 = vmatpush1.bf16.msra.mxu0 %v3672_v24  ;;  %2336 = vmatpush1.bf16.msra.mxu1 %v3675_v25  ;;  %v3750_v24 = vld [vmem:[#allocation8 + $0x668] ss:$24 sps:$4 sm:$0xff]  }
 0x1b5   :  { %2259 = vmatprep.subr.bf16.mxu0 %v3680_v26  ;;  %2337 = vmatprep.subr.bf16.mxu1 %v3683_v28  ;;  %v3753_v25 = vld [vmem:[#allocation8 + $0x310] ss:$24 sps:$4 sm:$0xff]   ;;  %v3758_v26 = vld [vmem:[#allocation8 + $0x69c] ss:$24 sps:$4 sm:$0xff]  }
 0x1b6   :  { %v3761_v28 = vld [vmem:[#allocation8 + $0x344] ss:$24 sps:$4 sm:$0xff]  }
 0x1b8   :  { %2260 = vmatpush1.bf16.msra.mxu0 %v3678_v27  ;;  %2338 = vmatpush1.bf16.msra.mxu1 %v3681_v29  ;;  %v3756_v27 = vld [vmem:[#allocation8 + $0x698] ss:$24 sps:$4 sm:$0xff]  }
 0x1b9   :  { %2261 = vmatprep.subr.bf16.mxu0 %v3686_v30  ;;  %2339 = vmatprep.subr.bf16.mxu1 %v3689_v32  ;;  %v3759_v29 = vld [vmem:[#allocation8 + $0x340] ss:$24 sps:$4 sm:$0xff]   ;;  %v3764_v30 = vld [vmem:[#allocation8 + $0x6cc] ss:$24 sps:$4 sm:$0xff]  }
 0x1ba   :  { %v3767_v32 = vld [vmem:[#allocation8 + $0x374] ss:$24 sps:$4 sm:$0xff]  }
 0x1bc   :  { %2262 = vmatpush1.bf16.msra.mxu0 %v3684_v33  ;;  %2340 = vmatpush1.bf16.msra.mxu1 %v3687_v34  ;;  %v3762_v33 = vld [vmem:[#allocation8 + $0x6c8] ss:$24 sps:$4 sm:$0xff]  }
 0x1bd   :  { %2263 = vmatprep.subr.bf16.mxu0 %v3692_v35  ;;  %2341 = vmatprep.subr.bf16.mxu1 %v3695_v36  ;;  %v3765_v34 = vld [vmem:[#allocation8 + $0x370] ss:$24 sps:$4 sm:$0xff]   ;;  %v3770_v35 = vld [vmem:[#allocation8 + $0x6fc] ss:$24 sps:$4 sm:$0xff]  }
 0x1be   :  { %v3773_v36 = vld [vmem:[#allocation8 + $0x3a4] ss:$24 sps:$4 sm:$0xff]  }
 0x1c0   :  { %2264 = vmatpush1.bf16.msra.mxu0 %v3690_v37  ;;  %2342 = vmatpush1.bf16.msra.mxu1 %v3693_v38  ;;  %v3771_v37 = vld [vmem:[#allocation8 + $0x3a0] ss:$24 sps:$4 sm:$0xff]   ;;  %v3776_v38 = vld [vmem:[#allocation8 + $0x72c] ss:$24 sps:$4 sm:$0xff]  }
 0x1c1   :  { %2265 = vmatprep.subr.bf16.mxu0 %v3698_v40  ;;  %2343 = vmatprep.subr.bf16.mxu1 %v3701_v41  ;;  %v3774_v40 = vld [vmem:[#allocation8 + $0x728] ss:$24 sps:$4 sm:$0xff]  }
 0x1c2   :  { %v3777_v41 = vld [vmem:[#allocation8 + $0x3d0] ss:$24 sps:$4 sm:$0xff]  }
 0x1c4   :  { %2266 = vmatpush1.bf16.msra.mxu0 %v3696_v42  ;;  %2344 = vmatpush1.bf16.msra.mxu1 %v3699_v43  ;;  %v3782_v42 = vld [vmem:[#allocation8 + $0x75c] ss:$24 sps:$4 sm:$0xff]  }
 0x1c5   :  { %2267 = vmatprep.subr.bf16.mxu0 %v3704_v45  ;;  %2345 = vmatprep.subr.bf16.mxu1 %v3707_v46  ;;  %v3785_v43 = vld [vmem:[#allocation8 + $0x404] ss:$24 sps:$4 sm:$0xff]   ;;  %v3780_v45 = vld [vmem:[#allocation8 + $0x758] ss:$24 sps:$4 sm:$0xff]  }
 0x1c6   :  { %v3783_v46 = vld [vmem:[#allocation8 + $0x400] ss:$24 sps:$4 sm:$0xff]  }
 0x1c8   :  { %2268 = vmatpush1.bf16.msra.mxu0 %v3702_v47  ;;  %2346 = vmatpush1.bf16.msra.mxu1 %v3705_v50  ;;  %v3788_v47 = vld [vmem:[#allocation8 + $0x78c] ss:$24 sps:$4 sm:$0xff]  }
 0x1c9   :  { %2269 = vmatprep.subr.bf16.mxu0 %v3710_v52  ;;  %2347 = vmatprep.subr.bf16.mxu1 %v3713_v53  ;;  %v3791_v50 = vld [vmem:[#allocation8 + $0x434] ss:$24 sps:$4 sm:$0xff]   ;;  %v3786_v52 = vld [vmem:[#allocation8 + $0x788] ss:$24 sps:$4 sm:$0xff]  }
 0x1ca   :  { %v3789_v53 = vld [vmem:[#allocation8 + $0x430] ss:$24 sps:$4 sm:$0xff]  }
 0x1cc   :  { %2270 = vmatpush1.bf16.msra.mxu0 %v3708_v54  ;;  %2348 = vmatpush1.bf16.msra.mxu1 %v3711_v55  ;;  %v3794_v54 = vld [vmem:[#allocation8 + $0x7bc] ss:$24 sps:$4 sm:$0xff]  }
 0x1cd   :  { %2271 = vmatprep.subr.bf16.mxu0 %v3716_v56  ;;  %2349 = vmatprep.subr.bf16.mxu1 %v3719_v57  ;;  %v3797_v55 = vld [vmem:[#allocation8 + $0x464] ss:$24 sps:$4 sm:$0xff]   ;;  %v3792_v56 = vld [vmem:[#allocation8 + $0x7b8] ss:$24 sps:$4 sm:$0xff]  }
 0x1ce   :  { %v3795_v57 = vld [vmem:[#allocation8 + $0x460] ss:$24 sps:$4 sm:$0xff]  }
 0x1d0   :  { %2272 = vmatpush1.bf16.msra.mxu0 %v3714_v58  ;;  %2350 = vmatpush1.bf16.msra.mxu1 %v3717_v59  ;;  %v3800_v58 = vld [vmem:[#allocation8 + $0x7ec] ss:$24 sps:$4 sm:$0xff]  }
 0x1d1   :  { %2273 = vmatprep.subr.bf16.mxu0 %v3722_v60  ;;  %2351 = vmatprep.subr.bf16.mxu1 %v3725_v61  ;;  %v3803_v59 = vld [vmem:[#allocation8 + $0x494] ss:$24 sps:$4 sm:$0xff]   ;;  %v3798_v60 = vld [vmem:[#allocation8 + $0x7e8] ss:$24 sps:$4 sm:$0xff]  }
 0x1d2   :  { %v3801_v61 = vld [vmem:[#allocation8 + $0x490] ss:$24 sps:$4 sm:$0xff]  }
 0x1d4   :  { %2274 = vmatpush1.bf16.msra.mxu0 %v3720_v62  ;;  %2352 = vmatpush1.bf16.msra.mxu1 %v3723_v0  ;;  %v3806_v62 = vld [vmem:[#allocation8 + $0x81c] ss:$24 sps:$4 sm:$0xff]  }
 0x1d5   :  { %2275 = vmatprep.subr.bf16.mxu0 %v3728_v1  ;;  %2353 = vmatprep.subr.bf16.mxu1 %v3731_v2  ;;  %v3809_v0 = vld [vmem:[#allocation8 + $0x4c4] ss:$24 sps:$4 sm:$0xff]   ;;  %v3804_v1 = vld [vmem:[#allocation8 + $0x818] ss:$24 sps:$4 sm:$0xff]  }
 0x1d6   :  { %v3807_v2 = vld [vmem:[#allocation8 + $0x4c0] ss:$24 sps:$4 sm:$0xff]  }
 0x1d8   :  { %2276 = vmatpush1.bf16.msra.mxu0 %v3726_v13  ;;  %2354 = vmatpush1.bf16.msra.mxu1 %v3729_v3  ;;  %v3812_v13 = vld [vmem:[#allocation8 + $0x84c] ss:$24 sps:$4 sm:$0xff]  }
 0x1d9   :  { %2277 = vmatprep.subr.bf16.mxu0 %v3734_v4  ;;  %2355 = vmatprep.subr.bf16.mxu1 %v3737_v51  ;;  %v3815_v3 = vld [vmem:[#allocation8 + $0x4f4] ss:$24 sps:$4 sm:$0xff]   ;;  %v3810_v4 = vld [vmem:[#allocation8 + $0x848] ss:$24 sps:$4 sm:$0xff]  }
 0x1da   :  { %v3813_v51 = vld [vmem:[#allocation8 + $0x4f0] ss:$24 sps:$4 sm:$0xff]  }
 0x1dc   :  { %2278 = vmatpush1.bf16.msra.mxu0 %v3732_v6  ;;  %2356 = vmatpush1.bf16.msra.mxu1 %v3735_v7  ;;  %v3818_v6 = vld [vmem:[#allocation8 + $0x87c] ss:$24 sps:$4 sm:$0xff]  }
 0x1dd   :  { %2288 = vmatprep.subr.bf16.mxu0 %v3740_v8  ;;  %2357 = vmatprep.subr.bf16.mxu1 %v3743_v9  ;;  %v3821_v7 = vld [vmem:[#allocation8 + $0x524] ss:$24 sps:$4 sm:$0xff]   ;;  %v3816_v8 = vld [vmem:[#allocation8 + $0x878] ss:$24 sps:$4 sm:$0xff]  }
 0x1de   :  { %v3819_v9 = vld [vmem:[#allocation8 + $0x520] ss:$24 sps:$4 sm:$0xff]  }
 0x1df   :  { %2280 = vmatmul.mubr.bf16.vlgmr.msra.gmra.mrb[4].mxu0 %v4295_v48 }
 0x1e0   :  { %2289 = vmatpush1.bf16.msra.mxu0 %v3738_v10  ;;  %2320 = vmatprep.mubr.bf16.mxu0 %v4301_v63  ;;  %v3824_v10 = vld [vmem:[#allocation8 + $0x8ac] ss:$24 sps:$4 sm:$0xff]  }
 0x1e1   :  { %2358 = vmatpush1.bf16.msra.mxu1 %v3741_v15  ;;  %2290 = vmatprep.subr.bf16.mxu0 %v3746_v16  ;;  %v3827_v15 = vld [vmem:[#allocation8 + $0x554] ss:$24 sps:$4 sm:$0xff]   ;;  %v3822_v16 = vld [vmem:[#allocation8 + $0x8a8] ss:$24 sps:$4 sm:$0xff]  }
 0x1e2   :  { %2359 = vmatprep.subr.bf16.mxu1 %v3749_v17  ;;  %v3825_v17 = vld [vmem:[#allocation8 + $0x550] ss:$24 sps:$4 sm:$0xff]  }
 0x1e4   :  { %2291 = vmatpush1.bf16.msra.mxu0 %v3744_v18  ;;  %v3830_v18 = vld [vmem:[#allocation8 + $0x8dc] ss:$24 sps:$4 sm:$0xff]  }
 0x1e5   :  { %2360 = vmatpush1.bf16.msra.mxu1 %v3747_v19  ;;  %2292 = vmatprep.subr.bf16.mxu0 %v3752_v21  ;;  %v3833_v19 = vld [vmem:[#allocation8 + $0x584] ss:$24 sps:$4 sm:$0xff]   ;;  %v3828_v21 = vld [vmem:[#allocation8 + $0x8d8] ss:$24 sps:$4 sm:$0xff]  }
 0x1e6   :  { %2370 = vmatprep.subr.bf16.mxu1 %v3755_v22  ;;  %v3831_v22 = vld [vmem:[#allocation8 + $0x580] ss:$24 sps:$4 sm:$0xff]  }
 0x1e8   :  { %2362 = vmatmul.mubr.bf16.vlgmr.msra.gmra.mrb[16].mxu1 %v4284_v31  ;;  %2293 = vmatpush1.bf16.msra.mxu0 %v3750_v24  ;;  %v3768_v31 = vld [vmem:[#allocation8 + $0x6f8] ss:$24 sps:$4 sm:$0xff]   ;;  %v3888_v24 = vld [vmem:[#allocation11 + $0x40] sm:$0xff]  }
 0x1e9   :  { %2371 = vmatpush1.bf16.msra.mxu1 %v3753_v25  ;;  %2402 = vmatprep.mubr.bf16.mxu1 %v4290_v44  ;;  %v3779_v44 = vld [vmem:[#allocation8 + $0x3d4] ss:$24 sps:$4 sm:$0xff]  }
 0x1ea   :  { %2294 = vmatprep.subr.bf16.mxu0 %v3758_v26  ;;  %2372 = vmatprep.subr.bf16.mxu1 %v3761_v28  ;;  %v3836_v25 = vld [vmem:[#allocation8 + $0x5b4] ss:$24 sps:$4 sm:$0xff]   ;;  %v3834_v28 = vld [vmem:[#allocation8 + $0x5b0] ss:$24 sps:$4 sm:$0xff]  }
 0x1eb   :  { %v3889_v26 = vld [vmem:[#allocation11] sm:$0xff]  }
 0x1ec   :  { %2295 = vmatpush1.bf16.msra.mxu0 %v3756_v27  ;;  %v3890_v27 = vld [vmem:[#allocation11 + $0x48] sm:$0xff]  }
 0x1ed   :  { %2373 = vmatpush1.bf16.msra.mxu1 %v3759_v29  ;;  %2296 = vmatprep.subr.bf16.mxu0 %v3764_v30  ;;  %v3839_v29 = vld [vmem:[#allocation8 + $0x5e4] ss:$24 sps:$4 sm:$0xff]   ;;  %v3891_v30 = vld [vmem:[#allocation11 + $0x8] sm:$0xff]  }
 0x1ee   :  { %2374 = vmatprep.subr.bf16.mxu1 %v3767_v32  ;;  %v3837_v32 = vld [vmem:[#allocation8 + $0x5e0] ss:$24 sps:$4 sm:$0xff]  }
 0x1f0   :  { %2297 = vmatpush1.bf16.msra.mxu0 %v3762_v33  ;;  %v3892_v33 = vld [vmem:[#allocation11 + $0x50] sm:$0xff]  }
 0x1f1   :  { %2375 = vmatpush1.bf16.msra.mxu1 %v3765_v34  ;;  %2298 = vmatprep.subr.bf16.mxu0 %v3770_v35  ;;  %v3842_v34 = vld [vmem:[#allocation8 + $0x614] ss:$24 sps:$4 sm:$0xff]  }
 0x1f2   :  { %2376 = vmatprep.subr.bf16.mxu1 %v3773_v36  ;;  %v3893_v35 = vld [vmem:[#allocation11 + $0x10] sm:$0xff]   ;;  %v3840_v36 = vld [vmem:[#allocation8 + $0x610] ss:$24 sps:$4 sm:$0xff]  }
 0x1f4   :  { %2299 = vmatpush1.bf16.msra.mxu0 %v3768_v31  ;;  %v3845_v31 = vld [vmem:[#allocation8 + $0x644] ss:$24 sps:$4 sm:$0xff]  }
 0x1f5   :  { %2377 = vmatpush1.bf16.msra.mxu1 %v3771_v37  ;;  %2300 = vmatprep.subr.bf16.mxu0 %v3776_v38  ;;  %v3894_v37 = vld [vmem:[#allocation11 + $0x58] sm:$0xff]  }
 0x1f6   :  { %2378 = vmatprep.subr.bf16.mxu1 %v3779_v44  ;;  %v3895_v38 = vld [vmem:[#allocation11 + $0x18] sm:$0xff]  }
 0x1f7   :  { %v3843_v44 = vld [vmem:[#allocation8 + $0x640] ss:$24 sps:$4 sm:$0xff]  }
 0x1f8   :  { %2301 = vmatpush1.bf16.msra.mxu0 %v3774_v40  ;;  %v3896_v40 = vld [vmem:[#allocation11 + $0x60] sm:$0xff]  }
 0x1f9   :  { %2379 = vmatpush1.bf16.msra.mxu1 %v3777_v41  ;;  %2302 = vmatprep.subr.bf16.mxu0 %v3782_v42  ;;  %v3848_v41 = vld [vmem:[#allocation8 + $0x674] ss:$24 sps:$4 sm:$0xff]  }
 0x1fa   :  { %2380 = vmatprep.subr.bf16.mxu1 %v3785_v43  ;;  %v3897_v42 = vld [vmem:[#allocation11 + $0x20] sm:$0xff]  }
 0x1fb   :  { %v3846_v43 = vld [vmem:[#allocation8 + $0x670] ss:$24 sps:$4 sm:$0xff]  }
 0x1fc   :  { %2303 = vmatpush1.bf16.msra.mxu0 %v3780_v45  ;;  %v3898_v45 = vld [vmem:[#allocation11 + $0x68] sm:$0xff]  }
 0x1fd   :  { %2381 = vmatpush1.bf16.msra.mxu1 %v3783_v46  ;;  %2304 = vmatprep.subr.bf16.mxu0 %v3788_v47  ;;  %v3851_v46 = vld [vmem:[#allocation8 + $0x6a4] ss:$24 sps:$4 sm:$0xff]   ;;  %v3849_v47 = vld [vmem:[#allocation8 + $0x6a0] ss:$24 sps:$4 sm:$0xff]  }
 0x1fe   :  { %2382 = vmatprep.subr.bf16.mxu1 %v3791_v50  ;;  %v3900_v50 = vld [vmem:[#allocation11 + $0x70] sm:$0xff]  }
 0x200   :  { %2305 = vmatpush1.bf16.msra.mxu0 %v3786_v52  ;;  %v3854_v52 = vld [vmem:[#allocation8 + $0x6d4] ss:$24 sps:$4 sm:$0xff]  }
 0x201   :  { %2383 = vmatpush1.bf16.msra.mxu1 %v3789_v53  ;;  %2306 = vmatprep.subr.bf16.mxu0 %v3794_v54 }
 0x202   :  { %2384 = vmatprep.subr.bf16.mxu1 %v3797_v55  ;;  %v3901_v55 = vld [vmem:[#allocation11 + $0x30] sm:$0xff]  }
 0x204   :  { %2307 = vmatpush1.bf16.msra.mxu0 %v3792_v56 }
 0x205   :  { %2385 = vmatpush1.bf16.msra.mxu1 %v3795_v57  ;;  %2308 = vmatprep.subr.bf16.mxu0 %v3800_v58  ;;  %v3852_v57 = vld [vmem:[#allocation8 + $0x6d0] ss:$24 sps:$4 sm:$0xff]   ;;  %v3902_v58 = vld [vmem:[#allocation11 + $0x78] sm:$0xff]  }
 0x206   :  { %2386 = vmatprep.subr.bf16.mxu1 %v3803_v59  ;;  %v3857_v59 = vld [vmem:[#allocation8 + $0x704] ss:$24 sps:$4 sm:$0xff]  }
 0x208   :  { %2309 = vmatpush1.bf16.msra.mxu0 %v3798_v60  ;;  %v3903_v60 = vld [vmem:[#allocation11 + $0x38] sm:$0xff]  }
 0x209   :  { %2387 = vmatpush1.bf16.msra.mxu1 %v3801_v61  ;;  %2310 = vmatprep.subr.bf16.mxu0 %v3806_v62  ;;  %v3855_v61 = vld [vmem:[#allocation8 + $0x700] ss:$24 sps:$4 sm:$0xff]   ;;  %v3904_v62 = vld [vmem:[#allocation11 + $0xc0] sm:$0xff]  }
 0x20a   :  { %2388 = vmatprep.subr.bf16.mxu1 %v3809_v0  ;;  %v3860_v0 = vld [vmem:[#allocation8 + $0x734] ss:$24 sps:$4 sm:$0xff]  }
 0x20c   :  { %2311 = vmatpush1.bf16.msra.mxu0 %v3804_v1  ;;  %v3858_v1 = vld [vmem:[#allocation8 + $0x730] ss:$24 sps:$4 sm:$0xff]  }
 0x20d   :  { %2389 = vmatpush1.bf16.msra.mxu1 %v3807_v2  ;;  %2312 = vmatprep.subr.bf16.mxu0 %v3812_v13  ;;  %v3863_v2 = vld [vmem:[#allocation8 + $0x764] ss:$24 sps:$4 sm:$0xff]   ;;  %v3861_v13 = vld [vmem:[#allocation8 + $0x760] ss:$24 sps:$4 sm:$0xff]  }
 0x20e   :  { %2390 = vmatprep.subr.bf16.mxu1 %v3815_v3  ;;  %v3866_v3 = vld [vmem:[#allocation8 + $0x794] ss:$24 sps:$4 sm:$0xff]  }
 0x210   :  { %2313 = vmatpush1.bf16.msra.mxu0 %v3810_v4  ;;  %v3864_v4 = vld [vmem:[#allocation8 + $0x790] ss:$24 sps:$4 sm:$0xff]  }
 0x211   :  { %2391 = vmatpush1.bf16.msra.mxu1 %v3813_v51  ;;  %2314 = vmatprep.subr.bf16.mxu0 %v3818_v6  ;;  %v3869_v51 = vld [vmem:[#allocation8 + $0x7c4] ss:$24 sps:$4 sm:$0xff]   ;;  %v3867_v6 = vld [vmem:[#allocation8 + $0x7c0] ss:$24 sps:$4 sm:$0xff]  }
 0x212   :  { %2392 = vmatprep.subr.bf16.mxu1 %v3821_v7  ;;  %v3872_v7 = vld [vmem:[#allocation8 + $0x7f4] ss:$24 sps:$4 sm:$0xff]  }
 0x214   :  { %2315 = vmatpush1.bf16.msra.mxu0 %v3816_v8  ;;  %v3870_v8 = vld [vmem:[#allocation8 + $0x7f0] ss:$24 sps:$4 sm:$0xff]  }
 0x215   :  { %2393 = vmatpush1.bf16.msra.mxu1 %v3819_v9  ;;  %2316 = vmatprep.subr.bf16.mxu0 %v3824_v10  ;;  %v3875_v9 = vld [vmem:[#allocation8 + $0x824] ss:$24 sps:$4 sm:$0xff]   ;;  %v3873_v10 = vld [vmem:[#allocation8 + $0x820] ss:$24 sps:$4 sm:$0xff]  }
 0x216   :  { %2394 = vmatprep.subr.bf16.mxu1 %v3827_v15  ;;  %v3878_v15 = vld [vmem:[#allocation8 + $0x854] ss:$24 sps:$4 sm:$0xff]  }
 0x218   :  { %2317 = vmatpush1.bf16.msra.mxu0 %v3822_v16  ;;  %v3876_v16 = vld [vmem:[#allocation8 + $0x850] ss:$24 sps:$4 sm:$0xff]  }
 0x219   :  { %2395 = vmatpush1.bf16.msra.mxu1 %v3825_v17  ;;  %2318 = vmatprep.subr.bf16.mxu0 %v3830_v18  ;;  %v3881_v17 = vld [vmem:[#allocation8 + $0x884] ss:$24 sps:$4 sm:$0xff]   ;;  %v3879_v18 = vld [vmem:[#allocation8 + $0x880] ss:$24 sps:$4 sm:$0xff]  }
 0x21a   :  { %2396 = vmatprep.subr.bf16.mxu1 %v3833_v19  ;;  %v3884_v19 = vld [vmem:[#allocation8 + $0x8b4] ss:$24 sps:$4 sm:$0xff]  }
 0x21c   :  { %2319 = vmatpush1.bf16.msra.mxu0 %v3828_v21  ;;  %v3882_v21 = vld [vmem:[#allocation8 + $0x8b0] ss:$24 sps:$4 sm:$0xff]  }
 0x21d   :  { %2397 = vmatpush1.bf16.msra.mxu1 %v3831_v22  ;;  %3340 = vmatprep.subr.bf16.mxu0 %v3888_v24  ;;  %v3887_v22 = vld [vmem:[#allocation8 + $0x8e4] ss:$24 sps:$4 sm:$0xff]   ;;  %v3885_v24 = vld [vmem:[#allocation8 + $0x8e0] ss:$24 sps:$4 sm:$0xff]  }
 0x21e   :  { %2398 = vmatprep.subr.bf16.mxu1 %v3836_v25  ;;  %v4327_v25 = vld [vmem:[#allocation10] sm:$0x3f] }
 0x21f   :  { %2321 = vmatmul.mubr.bf16.vlgmr.msra.gmra.mrb[4].mxu0 %v4311_v5 }
 0x220   :  { %3341 = vmatpush3.bf16.msra.mxu0 %v3889_v26  ;;  %v616_v26 = vrot.slane %v4327_v25, %v126_v12  ;;  %v3906_v12 = vld [vmem:[#allocation11 + $0xc8] sm:$0xff]  }
 0x221   :  { %2399 = vmatpush1.bf16.msra.mxu1 %v3834_v28  ;;  %3342 = vmatprep.subr.bf16.mxu0 %v3890_v27  ;;  %v620_v28 = vrot.slane %v4327_v25, %v130_v14  ;;  %v3907_v14 = vld [vmem:[#allocation11 + $0x88] sm:$0xff]  }
 0x222   :  { %2400 = vmatprep.subr.bf16.mxu1 %v3839_v29 }
 0x224   :  { %3343 = vmatpush3.bf16.msra.mxu0 %v3891_v30 }
 0x225   :  { %2401 = vmatpush1.bf16.msra.mxu1 %v3837_v32  ;;  %3344 = vmatprep.subr.bf16.mxu0 %v3892_v33 }
 0x226   :  { %2411 = vmatprep.subr.bf16.mxu1 %v3842_v34 }
 0x228   :  { %2403 = vmatmul.mubr.bf16.vlgmr.msra.gmra.mrb[16].mxu1 %v4295_v48  ;;  %3345 = vmatpush3.bf16.msra.mxu0 %v3893_v35  ;;  %v3899_v48 = vld [vmem:[#allocation11 + $0x28] sm:$0xff]  }
 0x229   :  { %2412 = vmatpush1.bf16.msra.mxu1 %v3840_v36  ;;  %2443 = vmatprep.mubr.bf16.mxu1 %v4301_v63 }
 0x22a   :  { %2413 = vmatprep.subr.bf16.mxu1 %v3845_v31  ;;  %3346 = vmatprep.subr.bf16.mxu0 %v3894_v37 }
 0x22c   :  { %3347 = vmatpush3.bf16.msra.mxu0 %v3895_v38  ;;  %v3905_v38 = vld [vmem:[#allocation11 + $0x80] sm:$0xff]  }
 0x22d   :  { %2414 = vmatpush1.bf16.msra.mxu1 %v3843_v44  ;;  %3348 = vmatprep.subr.bf16.mxu0 %v3896_v40  ;;  %v3908_v40 = vld [vmem:[#allocation11 + $0xd0] sm:$0xff]  }
 0x22e   :  { %2415 = vmatprep.subr.bf16.mxu1 %v3848_v41  ;;  %v3909_v41 = vld [vmem:[#allocation11 + $0x90] sm:$0xff]  }
 0x230   :  { %3349 = vmatpush3.bf16.msra.mxu0 %v3897_v42  ;;  %v3910_v42 = vld [vmem:[#allocation11 + $0xd8] sm:$0xff]  }
 0x231   :  { %2416 = vmatpush1.bf16.msra.mxu1 %v3846_v43  ;;  %3350 = vmatprep.subr.bf16.mxu0 %v3898_v45  ;;  %v3911_v43 = vld [vmem:[#allocation11 + $0x98] sm:$0xff]   ;;  %v3912_v45 = vld [vmem:[#allocation11 + $0xe0] sm:$0xff]  }
 0x232   :  { %v4322_v63 = vpop.f32.mrb[0].mxu0  ;;  %2417 = vmatprep.subr.bf16.mxu1 %v3851_v46  ;;  %v3913_v46 = vld [vmem:[#allocation11 + $0xa0] sm:$0xff]  }
 0x233   :  { %v4324_v53 = vpop.f32.mrb[1].mxu0  ;;  %v2118_v27 = vadd.f32 %v4322_v63, %v616_v26  ;;  %v3917_v63 = vld [vmem:[#allocation11 + $0xb0] sm:$0xff]  }
 0x234   :  { %v2121_v54 = vpop.f32.mrb[2].mxu0  ;;  %3351 = vmatpush3.bf16.msra.mxu0 %v3899_v48  ;;  %v2120_v29 = vadd.f32 %v4324_v53, %v620_v28  ;;  %v3914_v48 = vld [vmem:[#allocation11 + $0xe8] sm:$0xff]   ;;  %v3919_v53 = vld [vmem:[#allocation11 + $0xb8] sm:$0xff]  }
 0x235   :  { %2418 = vmatpush1.bf16.msra.mxu1 %v3849_v47  ;;  %v2122_v56 = vpop.f32.mrb[3].mxu0  ;;  %3352 = vmatprep.subr.bf16.mxu0 %v3900_v50  ;;  %v3915_v47 = vld [vmem:[#allocation11 + $0xa8] sm:$0xff]   ;;  %v3916_v50 = vld [vmem:[#allocation11 + $0xf0] sm:$0xff]   ;;  %v3920_v54 = vld [vmem:[#allocation11 + $0x140] sm:$0xff]  }
 0x236   :  { %2419 = vmatprep.subr.bf16.mxu1 %v3854_v52  ;;  %v3918_v52 = vld [vmem:[#allocation11 + $0xf8] sm:$0xff]   ;;  %v628_v56 = vrot.slane %v4327_v25, %v138_v23  ;;  %v3925_v23 = vld [vmem:[#allocation11 + $0x110] sm:$0xff]  }
 0x238   :  { %3353 = vmatpush3.bf16.msra.mxu0 %v3901_v55  ;;  %v624_v55 = vrot.slane %v4327_v25, %v134_v20  ;;  %v3923_v20 = vld [vmem:[#allocation11 + $0x108] sm:$0xff]  }
 0x239   :  { %2420 = vmatpush1.bf16.msra.mxu1 %v3852_v57  ;;  %3354 = vmatprep.subr.bf16.mxu0 %v3902_v58 }
 0x23a   :  { %2421 = vmatprep.subr.bf16.mxu1 %v3857_v59 }
 0x23c   :  { %3355 = vmatpush3.bf16.msra.mxu0 %v3903_v60 }
 0x23d   :  { %2422 = vmatpush1.bf16.msra.mxu1 %v3855_v61  ;;  %3362 = vmatprep.subr.bf16.mxu0 %v3904_v62 }
 0x23e   :  { %2423 = vmatprep.subr.bf16.mxu1 %v3860_v0 }
 0x241   :  { %2424 = vmatpush1.bf16.msra.mxu1 %v3858_v1 }
 0x242   :  { %2425 = vmatprep.subr.bf16.mxu1 %v3863_v2 }
 0x245   :  { %2426 = vmatpush1.bf16.msra.mxu1 %v3861_v13  ;;  %v3921_v13 = vld [vmem:[#allocation11 + $0x100] sm:$0xff]  }
 0x246   :  { %2427 = vmatprep.subr.bf16.mxu1 %v3866_v3 }
 0x249   :  { %2428 = vmatpush1.bf16.msra.mxu1 %v3864_v4  ;;  %v3922_v4 = vld [vmem:[#allocation11 + $0x148] sm:$0xff]  }
 0x24a   :  { %2429 = vmatprep.subr.bf16.mxu1 %v3869_v51  ;;  %v3924_v51 = vld [vmem:[#allocation11 + $0x150] sm:$0xff]  }
 0x24d   :  { %2430 = vmatpush1.bf16.msra.mxu1 %v3867_v6  ;;  %v3926_v6 = vld [vmem:[#allocation11 + $0x158] sm:$0xff]  }
 0x24e   :  { %2431 = vmatprep.subr.bf16.mxu1 %v3872_v7  ;;  %v3927_v7 = vld [vmem:[#allocation11 + $0x118] sm:$0xff]  }
 0x251   :  { %2432 = vmatpush1.bf16.msra.mxu1 %v3870_v8  ;;  %v3928_v8 = vld [vmem:[#allocation11 + $0x160] sm:$0xff]  }
 0x252   :  { %2433 = vmatprep.subr.bf16.mxu1 %v3875_v9  ;;  %v3929_v9 = vld [vmem:[#allocation11 + $0x120] sm:$0xff]  }
 0x255   :  { %2434 = vmatpush1.bf16.msra.mxu1 %v3873_v10  ;;  %v3930_v10 = vld [vmem:[#allocation11 + $0x168] sm:$0xff]  }
 0x256   :  { %2435 = vmatprep.subr.bf16.mxu1 %v3878_v15  ;;  %v3931_v15 = vld [vmem:[#allocation11 + $0x128] sm:$0xff]  }
 0x259   :  { %2436 = vmatpush1.bf16.msra.mxu1 %v3876_v16  ;;  %v3932_v16 = vld [vmem:[#allocation11 + $0x170] sm:$0xff]  }
 0x25a   :  { %2437 = vmatprep.subr.bf16.mxu1 %v3881_v17  ;;  %v3933_v17 = vld [vmem:[#allocation11 + $0x130] sm:$0xff]  }
 0x25d   :  { %2438 = vmatpush1.bf16.msra.mxu1 %v3879_v18  ;;  %v3934_v18 = vld [vmem:[#allocation11 + $0x178] sm:$0xff]  }
 0x25e   :  { %2439 = vmatprep.subr.bf16.mxu1 %v3884_v19  ;;  %v3935_v19 = vld [vmem:[#allocation11 + $0x138] sm:$0xff]  }
 0x261   :  { %2440 = vmatpush1.bf16.msra.mxu1 %v3882_v21  ;;  %v632_v21 = vrot.slane %v4327_v25, %v142_v49 }
 0x262   :  { %2441 = vmatprep.subr.bf16.mxu1 %v3887_v22  ;;  %v636_v22 = vrot.slane %v4327_v25, %v146_v39 }
 0x265   :  { %2442 = vmatpush1.bf16.msra.mxu1 %v3885_v24 }
 0x268   :  { %2444 = vmatmul.mubr.bf16.vlgmr.msra.gmra.mrb[16].mxu1 %v4311_v5 }
 0x27a   :  { %v2199_v30 = vpop.f32.mrb[12].mxu1 }
 0x27b   :  { %v3407_v32 = vadd.f32 %v2199_v30, %v2118_v27  ;;  %v2201_v33 = vpop.f32.mrb[13].mxu1 }
 0x27c   :  { %v3409_v34 = vadd.f32 %v2201_v33, %v2120_v29  ;;  %v2203_v35 = vpop.f32.mrb[14].mxu1 }
 0x27d   :  { %v2452_v5 = vmax.f32 %v3407_v32, 0.0  ;;  %v2204_v36 = vpop.f32.mrb[15].mxu1 }
 0x27e   :  { %v2453_v31 = vmax.f32 %v3409_v34, 0.0 }
 0x27f   :  { %v2458_v44 = vpack.c.bf16 %v2452_v5, %v2452_v5 }
 0x280   :  { %v2459_v37 = vpack.c.bf16 %v2453_v31, %v2453_v31 }
 0x282   :  { %2887 = vmatprep.mubr.bf16.mxu0 %v2459_v37 }
 0x283   :  { %2888 = vmatmul.mubr.bf16.vlgmr.msra.gmra.mrb[8].mxu0 %v2458_v44 }
 0x284   :  { %3363 = vmatpush3.bf16.msra.mxu0 %v3905_v38 }
 0x285   :  { %3364 = vmatprep.subr.bf16.mxu0 %v3906_v12 }
 0x288   :  { %3365 = vmatpush3.bf16.msra.mxu0 %v3907_v14 }
 0x289   :  { %3366 = vmatprep.subr.bf16.mxu0 %v3908_v40 }
 0x28c   :  { %3367 = vmatpush3.bf16.msra.mxu0 %v3909_v41 }
 0x28d   :  { %3368 = vmatprep.subr.bf16.mxu0 %v3910_v42 }
 0x290   :  { %3369 = vmatpush3.bf16.msra.mxu0 %v3911_v43 }
 0x291   :  { %3370 = vmatprep.subr.bf16.mxu0 %v3912_v45 }
 0x294   :  { %3371 = vmatpush3.bf16.msra.mxu0 %v3913_v46 }
 0x295   :  { %3372 = vmatprep.subr.bf16.mxu0 %v3914_v48 }
 0x298   :  { %3373 = vmatpush3.bf16.msra.mxu0 %v3915_v47 }
 0x299   :  { %3374 = vmatprep.subr.bf16.mxu0 %v3916_v50 }
 0x29c   :  { %3375 = vmatpush3.bf16.msra.mxu0 %v3917_v63 }
 0x29d   :  { %3376 = vmatprep.subr.bf16.mxu0 %v3918_v52 }
 0x2a0   :  { %3377 = vmatpush3.bf16.msra.mxu0 %v3919_v53 }
 0x2a1   :  { %3384 = vmatprep.subr.bf16.mxu0 %v3920_v54 }
 0x2f2   :  { %v2322_v57 = vpop.f32.mrb[4].mxu0 }
 0x2f3   :  { %v3410_v58 = vadd.f32 %v2322_v57, %v624_v55  ;;  %v2324_v59 = vpop.f32.mrb[5].mxu0 }
 0x2f4   :  { %v3411_v60 = vadd.f32 %v2324_v59, %v628_v56  ;;  %v2326_v61 = vpop.f32.mrb[6].mxu0 }
 0x2f5   :  { %v2454_v62 = vmax.f32 %v3410_v58, 0.0  ;;  %v2327_v0 = vpop.f32.mrb[7].mxu0 }
 0x2f6   :  { %v2455_v1 = vmax.f32 %v3411_v60, 0.0 }
 0x2f7   :  { %v2460_v3 = vpack.c.bf16 %v2454_v62, %v2454_v62 }
 0x2f8   :  { %v2461_v2 = vpack.c.bf16 %v2455_v1, %v2455_v1 }
 0x2fa   :  { %2927 = vmatprep.mubr.bf16.mxu0 %v2461_v2 }
 0x2fb   :  { %2928 = vmatmul.mubr.bf16.vlgmr.msra.gmra.mrb[12].mxu0 %v2460_v3 }
 0x2fc   :  { %3385 = vmatpush3.bf16.msra.mxu0 %v3921_v13 }
 0x2fd   :  { %3386 = vmatprep.subr.bf16.mxu0 %v3922_v4 }
 0x300   :  { %3387 = vmatpush3.bf16.msra.mxu0 %v3923_v20 }
 0x301   :  { %3388 = vmatprep.subr.bf16.mxu0 %v3924_v51 }
 0x304   :  { %3389 = vmatpush3.bf16.msra.mxu0 %v3925_v23 }
 0x305   :  { %3390 = vmatprep.subr.bf16.mxu0 %v3926_v6 }
 0x308   :  { %3391 = vmatpush3.bf16.msra.mxu0 %v3927_v7 }
 0x309   :  { %3392 = vmatprep.subr.bf16.mxu0 %v3928_v8 }
 0x30c   :  { %3393 = vmatpush3.bf16.msra.mxu0 %v3929_v9 }
 0x30d   :  { %3394 = vmatprep.subr.bf16.mxu0 %v3930_v10 }
 0x310   :  { %3395 = vmatpush3.bf16.msra.mxu0 %v3931_v15 }
 0x311   :  { %3396 = vmatprep.subr.bf16.mxu0 %v3932_v16 }
 0x314   :  { %3397 = vmatpush3.bf16.msra.mxu0 %v3933_v17 }
 0x315   :  { %3398 = vmatprep.subr.bf16.mxu0 %v3934_v18 }
 0x318   :  { %3399 = vmatpush3.bf16.msra.mxu0 %v3935_v19 }
 0x33b   :  { %v2445_v24 = vpop.f32.mrb[16].mxu1 }
 0x33c   :  { %v3412_v26 = vadd.f32 %v2445_v24, %v632_v21  ;;  %v2447_v28 = vpop.f32.mrb[17].mxu1 }
 0x33d   :  { %v3413_v27 = vadd.f32 %v2447_v28, %v636_v22  ;;  %v2449_v29 = vpop.f32.mrb[18].mxu1 }
 0x33e   :  { %v2456_v30 = vmax.f32 %v3412_v26, 0.0  ;;  %v2450_v32 = vpop.f32.mrb[19].mxu1 }
 0x33f   :  { %v2457_v33 = vmax.f32 %v3413_v27, 0.0 }
 0x340   :  { %v2462_v35 = vpack.c.bf16 %v2456_v30, %v2456_v30 }
 0x341   :  { %v2463_v34 = vpack.c.bf16 %v2457_v33, %v2457_v33 }
 0x343   :  { %2967 = vmatprep.mubr.bf16.mxu0 %v2463_v34 }
 0x344   :  { %2968 = vmatmul.mubr.bf16.vlgmr.msra.gmra.mrb[16].mxu0 %v2462_v35 }
 0x356   :  { %v3356_v5 = vpop.f32.mrb[8].mxu0 }
 0x357   :  { %v3357_v36 = vpop.f32.mrb[9].mxu0 }
 0x358   :  { %v3358_v31 = vadd.f32 %v3357_v36, %v3356_v5  ;;  %v3359_v49 = vpop.f32.mrb[10].mxu0 }
 0x359   :  { %v3360_v37 = vpop.f32.mrb[11].mxu0 }
 0x35a   :  { %v2890_v25 = vadd.f32 %v3358_v31, %v3291_v11 }
 0x3ce   :  { %v3378_v38 = vpop.f32.mrb[12].mxu0 }
 0x3cf   :  { %v3379_v39 = vpop.f32.mrb[13].mxu0 }
 0x3d0   :  { %v3380_v44 = vadd.f32 %v3379_v39, %v3378_v38  ;;  %v3381_v12 = vpop.f32.mrb[14].mxu0 }
 0x3d1   :  { %v3382_v14 = vpop.f32.mrb[15].mxu0 }
 0x3d2   :  { %v2930_v40 = vadd.f32 %v3380_v44, %v2890_v25 }
 0x417   :  { %v3400_v41 = vpop.f32.mrb[16].mxu0 }
 0x418   :  { %v3401_v42 = vpop.f32.mrb[17].mxu0 }
 0x419   :  { %v3402_v43 = vadd.f32 %v3401_v42, %v3400_v41  ;;  %v3403_v45 = vpop.f32.mrb[18].mxu0 }
 0x41a   :  { %v3404_v46 = vpop.f32.mrb[19].mxu0 }
 0x41b   :  { %v2970_v48 = vadd.f32 %v3402_v43, %v2930_v40 }
 0x41d   :  { %2975 = vst [vmem:[#allocation14] sm:$0xff] %v2970_v48 }
 0x41e   :  { %4101 = shalt.err (!%p4098_p4)
}
 0x41f   :  { %s4102_s11 = scalar_lea.hbm %s4368_s7, 128 }
 0x420   :  { %p4103_p5 = scmp.ne.s32.totalorder %s4368_s7, %s4102_s11  ;;  %p4106_p6 = scmp.lt.u32.totalorder %s4102_s11, %s4368_s7 }
 0x422   :  { %p4108_p7 = pnand %p4106_p6, %p4103_p5 }
 0x424   :  { %4111 = shalt.err (!%p4108_p7)
}
 0x425   :  { %2985 = dma.vmem_to_hbm [thread:$0]  %s2983_s13, 128, %s4368_s7, [#allocation4]  }
 0x426   :  { %4120 = dma.done.wait [#allocation4], 128  }
 0x427   :  { %4121 = vsyncadd [#allocation4], 4294967168 }
 0x428   :  { %2989 = vsyncpa [#allocation3], 1 }
 0x429   :  { %2990 = vsyncpa [#allocation6], 1 }
 0x42a   :  { %2991 = vsyncpa [#allocation9], 1 }
 0x42b   :  { %2992 = vsyncpa [#allocation12], 1 }
 0x42c   :  { %2993 = vsyncpa [#allocation4], 1 }

</bundles_post_ra>
